<compile_context>
chip_gen: v7x
topology: tpu7x:2x2x1
jax: 0.10.0
libtpu: 0.0.40
codegen_flags: <defaults>
</compile_context>

<pallas_src>
import jax
import jax.numpy as jnp
from jax.experimental import pallas as pl
from jax.experimental.pallas import tpu as pltpu

# ----------------------- model configuration -----------------------
B, S = 2, 16          # batch, sequence length
D = 128               # hidden size
H, DH = 4, 32         # heads, head dim (H * DH == D)
MLP = 256             # MLP intermediate size
VOCAB = 256           # vocabulary size
LAYERS = 2            # decoder layers
EPS = 1e-6
ROPE_THETA = 10000.0
NEG_BIG = -1e30


# ----------------------- fused per-(batch, layer) Pallas kernel -----------------------

def _model_kernel(x_ref, cos_ref, sin_ref, bias_ref,
                  ln1_ref, wqkv_ref, wo_ref,
                  ln2_ref, wgu_ref, wd_ref,
                  lnf_ref, head_ref,
                  out_ref, resid_ref):
    """One (batch element, layer) step of the causal-LM forward.

    grid = (B, LAYERS); the residual stream persists in `resid_ref` (VMEM
    scratch) across the layer axis; logits are emitted at the last layer.
    """
    layer = pl.program_id(1)

    @pl.when(layer == 0)
    def _():
        resid_ref[...] = x_ref[...]                      # [S, D] f32 embeddings

    x = resid_ref[...]                                   # [S, D] f32 residual stream
    cosf = cos_ref[...]                                  # [S, D] lane-dense RoPE tables
    sinf = sin_ref[...]
    bias = bias_ref[...]                                 # [S, S] additive causal bias

    def rmsnorm(v, w):                                   # v: [S, D], w: [1, D]
        var = jnp.mean(v * v, axis=-1, keepdims=True)
        return v * jax.lax.rsqrt(var + EPS) * w

    # ---- attention: RMSNorm prologue + one fused q|k|v|q_rot|k_rot matmul ----
    h = rmsnorm(x, ln1_ref[...])
    qkv = jnp.dot(h.astype(jnp.bfloat16), wqkv_ref[...],
                  preferred_element_type=jnp.float32)    # [S, 5D]
    q, k = qkv[:, :D], qkv[:, D:2 * D]
    v = qkv[:, 2 * D:3 * D].astype(jnp.bfloat16)
    qr, kr = qkv[:, 3 * D:4 * D], qkv[:, 4 * D:5 * D]

    # Full-width RoPE (rotate-half companions come straight out of the matmul;
    # softmax scale already folded into the Q / Q_rot weight columns).
    q = (q * cosf + qr * sinf).astype(jnp.bfloat16)      # [S, D]
    k = (k * cosf + kr * sinf).astype(jnp.bfloat16)

    # ---- per-head attention with wo fused as a K-split accumulation ----
    for hh in range(H):
        lanes = pl.ds(hh * DH, DH)
        qh, kh, vh = q[:, hh * DH:(hh + 1) * DH], k[:, hh * DH:(hh + 1) * DH], \
            v[:, hh * DH:(hh + 1) * DH]
        s = jax.lax.dot_general(qh, kh, (((1,), (1,)), ((), ())),
                                preferred_element_type=jnp.float32) + bias
        m = jnp.max(s, axis=-1, keepdims=True)
        p = jnp.exp(s - m)
        p = p / jnp.sum(p, axis=-1, keepdims=True)       # exact normalization
        oh = jnp.dot(p.astype(jnp.bfloat16), vh,
                     preferred_element_type=jnp.float32) # [S, DH]
        # output projection K-split: accumulate straight onto the residual
        x = x + jnp.dot(oh.astype(jnp.bfloat16), wo_ref[lanes, :],
                        preferred_element_type=jnp.float32)

    # ---- MLP: RMSNorm prologue + fused gate|up matmul + SwiGLU epilogue ----
    h2 = rmsnorm(x, ln2_ref[...])
    gu = jnp.dot(h2.astype(jnp.bfloat16), wgu_ref[...],
                 preferred_element_type=jnp.float32)     # [S, 2*MLP]
    g, u = gu[:, :MLP], gu[:, MLP:]
    act = (g * jax.nn.sigmoid(g) * u).astype(jnp.bfloat16)
    x = x + jnp.dot(act, wd_ref[...], preferred_element_type=jnp.float32)

    resid_ref[...] = x

    # ---- final RMSNorm + LM head (lane-dense [S, VOCAB] output) ----
    @pl.when(layer == LAYERS - 1)
    def _():
        xf = rmsnorm(x, lnf_ref[...])
        out_ref[...] = jnp.dot(xf.astype(jnp.bfloat16), head_ref[...],
                               preferred_element_type=jnp.float32)


# ----------------------- parameter construction -----------------------

def _rotate_half_cols(w):
    """Per-head rotate-half companion of a [D, D] projection weight.

    Column c = h*DH + j of the result produces rotate_half(output)_c, i.e.
    -out[h, j+half] for j < half and +out[h, j-half] for j >= half.
    """
    half = DH // 2
    wr = w.reshape(D, H, DH)
    w1, w2 = wr[:, :, :half], wr[:, :, half:]
    return jnp.concatenate([-w2, w1], axis=-1).reshape(D, D)


def init_params(key):
    init_scale = 0.02
    softmax_scale = 1.0 / (DH ** 0.5)

    keys = jax.random.split(key, 2 + LAYERS)

    def dense(k, shape):
        return init_scale * jax.random.normal(k, shape, dtype=jnp.float32)

    wqkv5, wo, wgu, wd = [], [], [], []
    for li in range(LAYERS):
        lk = jax.random.split(keys[2 + li], 7)
        wq = dense(lk[0], (D, D)) * softmax_scale        # fold softmax scale into Q
        wk = dense(lk[1], (D, D))
        wv = dense(lk[2], (D, D))
        wq_rot, wk_rot = _rotate_half_cols(wq), _rotate_half_cols(wk)
        wqkv5.append(jnp.concatenate([wq, wk, wv, wq_rot, wk_rot],
                                     axis=1).astype(jnp.bfloat16))   # [D, 5D]
        wo.append(dense(lk[3], (D, D)).astype(jnp.bfloat16))
        wgu.append(jnp.concatenate([dense(lk[4], (D, MLP)),
                                    dense(lk[5], (D, MLP))],
                                   axis=1).astype(jnp.bfloat16))     # [D, 2*MLP]
        wd.append(dense(lk[6], (MLP, D)).astype(jnp.bfloat16))

    return {
        "embed": init_scale * jax.random.normal(keys[0], (VOCAB, D), dtype=jnp.float32),
        "lm_head": dense(keys[1], (D, VOCAB)).astype(jnp.bfloat16),
        "ln1": jnp.ones((LAYERS, 1, D), jnp.float32),
        "ln2": jnp.ones((LAYERS, 1, D), jnp.float32),
        "ln_f": jnp.ones((1, D), jnp.float32),
        "wqkv": jnp.stack(wqkv5),                        # [L, D, 5D] bf16
        "wo": jnp.stack(wo),                             # [L, D, D]  bf16
        "wgu": jnp.stack(wgu),                           # [L, D, 2M] bf16
        "wd": jnp.stack(wd),                             # [L, M, D]  bf16
    }


# ----------------------- plain-JAX glue -----------------------

def _rope_tables():
    """Lane-dense [S, D] cos/sin tables (rotate-half duplication, tiled over H)."""
    half = DH // 2
    inv_freq = 1.0 / (ROPE_THETA ** (jnp.arange(half, dtype=jnp.float32) / half))
    ang = jnp.arange(S, dtype=jnp.float32)[:, None] * inv_freq[None, :]   # [S, half]
    cos_h = jnp.concatenate([jnp.cos(ang), jnp.cos(ang)], axis=-1)        # [S, DH]
    sin_h = jnp.concatenate([jnp.sin(ang), jnp.sin(ang)], axis=-1)
    return jnp.tile(cos_h, (1, H)), jnp.tile(sin_h, (1, H))               # [S, D]


def forward(params, input_ids):
    """Causal-LM forward: input_ids [B, S] (int32) -> logits [B, S, VOCAB]."""
    # Token-embedding gather stays in plain JAX (glue); everything else is one kernel.
    x = params["embed"][input_ids].reshape(B * S, D)

    cosf, sinf = _rope_tables()
    row = jax.lax.broadcasted_iota(jnp.int32, (S, S), 0)
    col = jax.lax.broadcasted_iota(jnp.int32, (S, S), 1)
    bias = jnp.where(col <= row, 0.0, NEG_BIG).astype(jnp.float32)        # [S, S]

    operands = (x, cosf, sinf, bias,
                params["ln1"], params["wqkv"], params["wo"],
                params["ln2"], params["wgu"], params["wd"],
                params["ln_f"], params["lm_head"])

    # Shared (grid-invariant) operands.
    def const_spec(shape):
        return pl.BlockSpec(shape, lambda b, l: (0,) * len(shape))

    # Per-layer weights: stream layer l's tile while layer l-1 computes.
    def layer_spec(shape):  # shape = full array shape [LAYERS, ...]
        return pl.BlockSpec((None,) + shape[1:],
                            lambda b, l: (l,) + (0,) * (len(shape) - 1))

    in_specs = [
        pl.BlockSpec((S, D), lambda b, l: (b, 0)),       # embeddings (per batch elem)
        const_spec((S, D)),                              # cos
        const_spec((S, D)),                              # sin
        const_spec((S, S)),                              # causal bias
        layer_spec(params["ln1"].shape),                 # [1, D] in kernel
        layer_spec(params["wqkv"].shape),                # [D, 5D]
        layer_spec(params["wo"].shape),                  # [D, D]
        layer_spec(params["ln2"].shape),                 # [1, D]
        layer_spec(params["wgu"].shape),                 # [D, 2M]
        layer_spec(params["wd"].shape),                  # [M, D]
        const_spec((1, D)),                              # final norm
        const_spec((D, VOCAB)),                          # lm head
    ]

    logits = pl.pallas_call(
        _model_kernel,
        out_shape=jax.ShapeDtypeStruct((B * S, VOCAB), jnp.float32),
        grid=(B, LAYERS),
        in_specs=in_specs,
        out_specs=pl.BlockSpec((S, VOCAB), lambda b, l: (b, 0)),
        scratch_shapes=[pltpu.VMEM((S, D), jnp.float32)],   # residual stream
        compiler_params=pltpu.CompilerParams(
            dimension_semantics=("parallel", "arbitrary"),
            vmem_limit_bytes=32 * 1024 * 1024),
    )(*operands)
    return logits.reshape(B, S, VOCAB)


if __name__ == "__main__":
    key = jax.random.PRNGKey(0)
    k_param, k_ids = jax.random.split(key)
    params = init_params(k_param)
    input_ids = jax.random.randint(k_ids, (B, S), 0, VOCAB, dtype=jnp.int32)

    logits = jax.jit(forward)(params, input_ids)
    jax.block_until_ready(logits)
    assert logits.shape == (B, S, VOCAB)
    assert bool(jnp.all(jnp.isfinite(logits)))
    print("KERNEL_OK")
</pallas_src>

<mosaic_0001>
module attributes {stable_mosaic.version = 11 : i64} {
  func.func @_model_kernel(%arg0: i32, %arg1: i32, %arg2: memref<16x128xf32, #tpu.memory_space<vmem>>, %arg3: memref<16x128xf32, #tpu.memory_space<vmem>>, %arg4: memref<16x128xf32, #tpu.memory_space<vmem>>, %arg5: memref<16x16xf32, #tpu.memory_space<vmem>>, %arg6: memref<1x1x128xf32, #tpu.memory_space<vmem>>, %arg7: memref<1x128x640xbf16, #tpu.memory_space<vmem>>, %arg8: memref<1x128x128xbf16, #tpu.memory_space<vmem>>, %arg9: memref<1x1x128xf32, #tpu.memory_space<vmem>>, %arg10: memref<1x128x512xbf16, #tpu.memory_space<vmem>>, %arg11: memref<1x256x128xbf16, #tpu.memory_space<vmem>>, %arg12: memref<1x128xf32, #tpu.memory_space<vmem>>, %arg13: memref<128x256xbf16, #tpu.memory_space<vmem>>, %arg14: memref<16x256xf32, #tpu.memory_space<vmem>>, %arg15: memref<16x128xf32, #tpu.memory_space<vmem>>) attributes {dimension_semantics = [#tpu.dimension_semantics<parallel>, #tpu.dimension_semantics<arbitrary>], iteration_bounds = array<i64: 2, 2>, scalar_prefetch = 0 : i64, scratch_operands = 1 : i64, tpu.core_type = #tpu.core_type<tc>, window_params = [{transform_indices = @transform_0, window_bounds = array<i64: 16, 128>}, {pipeline_mode = #tpu.pipeline_mode<synchronous>, transform_indices = @transform_1, window_bounds = array<i64: 16, 128>}, {pipeline_mode = #tpu.pipeline_mode<synchronous>, transform_indices = @transform_2, window_bounds = array<i64: 16, 128>}, {pipeline_mode = #tpu.pipeline_mode<synchronous>, transform_indices = @transform_3, window_bounds = array<i64: 16, 16>}, {transform_indices = @transform_4, window_bounds = array<i64: 1, 1, 128>}, {transform_indices = @transform_5, window_bounds = array<i64: 1, 128, 640>}, {transform_indices = @transform_6, window_bounds = array<i64: 1, 128, 128>}, {transform_indices = @transform_7, window_bounds = array<i64: 1, 1, 128>}, {transform_indices = @transform_8, window_bounds = array<i64: 1, 128, 512>}, {transform_indices = @transform_9, window_bounds = array<i64: 1, 256, 128>}, {pipeline_mode = #tpu.pipeline_mode<synchronous>, transform_indices = @transform_10, window_bounds = array<i64: 1, 128>}, {pipeline_mode = #tpu.pipeline_mode<synchronous>, transform_indices = @transform_11, window_bounds = array<i64: 128, 256>}, {transform_indices = @transform_12, window_bounds = array<i64: 16, 256>}]} {
    %c0_i32 = arith.constant 0 : i32
    %0 = arith.cmpi eq, %arg1, %c0_i32 : i32
    %1 = arith.extui %0 : i1 to i32
    %c0_i32_0 = arith.constant 0 : i32
    %2 = arith.cmpi ne, %1, %c0_i32_0 : i32
    scf.if %2 {
      %c0_64 = arith.constant 0 : index
      %c0_65 = arith.constant 0 : index
      %159 = vector.load %arg2[%c0_64, %c0_65] : memref<16x128xf32, #tpu.memory_space<vmem>>, vector<16x128xf32>
      %c0_66 = arith.constant 0 : index
      %c0_67 = arith.constant 0 : index
      %160 = vector.load %arg15[%c0_66, %c0_67] : memref<16x128xf32, #tpu.memory_space<vmem>>, vector<16x128xf32>
      tpu.vector_store %arg15[%c0_66, %c0_67], %159 {strides = array<i32>} : memref<16x128xf32, #tpu.memory_space<vmem>>, vector<16x128xf32>,
    } else {
    }
    %c0 = arith.constant 0 : index
    %c0_1 = arith.constant 0 : index
    %3 = vector.load %arg15[%c0, %c0_1] : memref<16x128xf32, #tpu.memory_space<vmem>>, vector<16x128xf32>
    %c0_2 = arith.constant 0 : index
    %c0_3 = arith.constant 0 : index
    %4 = vector.load %arg3[%c0_2, %c0_3] : memref<16x128xf32, #tpu.memory_space<vmem>>, vector<16x128xf32>
    %c0_4 = arith.constant 0 : index
    %c0_5 = arith.constant 0 : index
    %5 = vector.load %arg4[%c0_4, %c0_5] : memref<16x128xf32, #tpu.memory_space<vmem>>, vector<16x128xf32>
    %c0_6 = arith.constant 0 : index
    %c0_7 = arith.constant 0 : index
    %6 = vector.load %arg5[%c0_6, %c0_7] : memref<16x16xf32, #tpu.memory_space<vmem>>, vector<16x16xf32>
    %c0_8 = arith.constant 0 : index
    %c0_9 = arith.constant 0 : index
    %c0_10 = arith.constant 0 : index
    %7 = vector.load %arg6[%c0_8, %c0_9, %c0_10] : memref<1x1x128xf32, #tpu.memory_space<vmem>>, vector<1x1x128xf32>
    %8 = vector.shape_cast %7 : vector<1x1x128xf32> to vector<1x128xf32>
    %9 = arith.mulf %3, %3 : vector<16x128xf32>
    %cst = arith.constant dense<0.000000e+00> : vector<16xf32>
    %10 = vector.multi_reduction <add>, %9, %cst [1] : vector<16x128xf32> to vector<16xf32>
    %11 = vector.shape_cast %10 : vector<16xf32> to vector<16x1xf32>
    %cst_11 = arith.constant 1.280000e+02 : f32
    %12 = vector.broadcast %cst_11 : f32 to vector<16x1xf32>
    %13 = arith.divf %11, %12 : vector<16x1xf32>
    %cst_12 = arith.constant 9.99999997E-7 : f32
    %14 = vector.broadcast %cst_12 : f32 to vector<16x1xf32>
    %15 = arith.addf %13, %14 : vector<16x1xf32>
    %16 = math.rsqrt %15 : vector<16x1xf32>
    %17 = vector.broadcast %16 : vector<16x1xf32> to vector<16x128xf32>
    %18 = arith.mulf %3, %17 : vector<16x128xf32>
    %19 = vector.broadcast %8 : vector<1x128xf32> to vector<16x128xf32>
    %20 = arith.mulf %18, %19 : vector<16x128xf32>
    %21 = arith.truncf %20 : vector<16x128xf32> to vector<16x128xbf16>
    %c0_13 = arith.constant 0 : index
    %c0_14 = arith.constant 0 : index
    %c0_15 = arith.constant 0 : index
    %22 = vector.load %arg7[%c0_13, %c0_14, %c0_15] : memref<1x128x640xbf16, #tpu.memory_space<vmem>>, vector<1x128x640xbf16>
    %23 = vector.shape_cast %22 : vector<1x128x640xbf16> to vector<128x640xbf16>
    %cst_16 = arith.constant dense<0.000000e+00> : vector<16x640xf32>
    %24 = tpu.matmul %21, %23, %cst_16 {dimension_numbers = #tpu.dot_dimension_numbers<[1], [0], [0], [1], [0, 0, 1, 1], [], []>} : vector<16x128xbf16>, vector<128x640xbf16>, vector<16x640xf32> -> vector<16x640xf32>
    %25 = vector.extract_strided_slice %24 {offsets = [0, 0], sizes = [16, 128], strides = [1, 1]} : vector<16x640xf32> to vector<16x128xf32>
    %26 = vector.extract_strided_slice %24 {offsets = [0, 128], sizes = [16, 128], strides = [1, 1]} : vector<16x640xf32> to vector<16x128xf32>
    %27 = vector.extract_strided_slice %24 {offsets = [0, 256], sizes = [16, 128], strides = [1, 1]} : vector<16x640xf32> to vector<16x128xf32>
    %28 = arith.truncf %27 : vector<16x128xf32> to vector<16x128xbf16>
    %29 = vector.extract_strided_slice %24 {offsets = [0, 384], sizes = [16, 128], strides = [1, 1]} : vector<16x640xf32> to vector<16x128xf32>
    %30 = vector.extract_strided_slice %24 {offsets = [0, 512], sizes = [16, 128], strides = [1, 1]} : vector<16x640xf32> to vector<16x128xf32>
    %31 = arith.mulf %25, %4 : vector<16x128xf32>
    %32 = arith.mulf %29, %5 : vector<16x128xf32>
    %33 = arith.addf %31, %32 : vector<16x128xf32>
    %34 = arith.truncf %33 : vector<16x128xf32> to vector<16x128xbf16>
    %35 = arith.mulf %26, %4 : vector<16x128xf32>
    %36 = arith.mulf %30, %5 : vector<16x128xf32>
    %37 = arith.addf %35, %36 : vector<16x128xf32>
    %38 = arith.truncf %37 : vector<16x128xf32> to vector<16x128xbf16>
    %39 = vector.extract_strided_slice %34 {offsets = [0, 0], sizes = [16, 32], strides = [1, 1]} : vector<16x128xbf16> to vector<16x32xbf16>
    %40 = vector.extract_strided_slice %38 {offsets = [0, 0], sizes = [16, 32], strides = [1, 1]} : vector<16x128xbf16> to vector<16x32xbf16>
    %41 = vector.extract_strided_slice %28 {offsets = [0, 0], sizes = [16, 32], strides = [1, 1]} : vector<16x128xbf16> to vector<16x32xbf16>
    %cst_17 = arith.constant dense<0.000000e+00> : vector<16x16xf32>
    %42 = tpu.matmul %39, %40, %cst_17 {dimension_numbers = #tpu.dot_dimension_numbers<[1], [1], [0], [0], [0, 0, 1, 0], [], []>} : vector<16x32xbf16>, vector<16x32xbf16>, vector<16x16xf32> -> vector<16x16xf32>
    %43 = arith.addf %42, %6 : vector<16x16xf32>
    %cst_18 = arith.constant dense<0xFF800000> : vector<16xf32>
    %44 = vector.multi_reduction <maximumf>, %43, %cst_18 [1] : vector<16x16xf32> to vector<16xf32>
    %45 = vector.shape_cast %44 : vector<16xf32> to vector<16x1xf32>
    %46 = vector.broadcast %45 : vector<16x1xf32> to vector<16x16xf32>
    %47 = arith.subf %43, %46 : vector<16x16xf32>
    %48 = math.exp %47 : vector<16x16xf32>
    %cst_19 = arith.constant dense<0.000000e+00> : vector<16xf32>
    %49 = vector.multi_reduction <add>, %48, %cst_19 [1] : vector<16x16xf32> to vector<16xf32>
    %50 = vector.shape_cast %49 : vector<16xf32> to vector<16x1xf32>
    %51 = vector.broadcast %50 : vector<16x1xf32> to vector<16x16xf32>
    %52 = arith.divf %48, %51 : vector<16x16xf32>
    %53 = arith.truncf %52 : vector<16x16xf32> to vector<16x16xbf16>
    %cst_20 = arith.constant dense<0.000000e+00> : vector<16x32xf32>
    %54 = tpu.matmul %53, %41, %cst_20 {dimension_numbers = #tpu.dot_dimension_numbers<[1], [0], [0], [1], [0, 0, 1, 1], [], []>} : vector<16x16xbf16>, vector<16x32xbf16>, vector<16x32xf32> -> vector<16x32xf32>
    %55 = arith.truncf %54 : vector<16x32xf32> to vector<16x32xbf16>
    %c0_21 = arith.constant 0 : index
    %c0_22 = arith.constant 0 : index
    %c0_23 = arith.constant 0 : index
    %56 = vector.load %arg8[%c0_21, %c0_22, %c0_23] : memref<1x128x128xbf16, #tpu.memory_space<vmem>>, vector<1x32x128xbf16>
    %57 = vector.shape_cast %56 : vector<1x32x128xbf16> to vector<32x128xbf16>
    %cst_24 = arith.constant dense<0.000000e+00> : vector<16x128xf32>
    %58 = tpu.matmul %55, %57, %cst_24 {dimension_numbers = #tpu.dot_dimension_numbers<[1], [0], [0], [1], [0, 0, 1, 1], [], []>} : vector<16x32xbf16>, vector<32x128xbf16>, vector<16x128xf32> -> vector<16x128xf32>
    %59 = arith.addf %3, %58 : vector<16x128xf32>
    %60 = vector.extract_strided_slice %34 {offsets = [0, 32], sizes = [16, 32], strides = [1, 1]} : vector<16x128xbf16> to vector<16x32xbf16>
    %61 = vector.extract_strided_slice %38 {offsets = [0, 32], sizes = [16, 32], strides = [1, 1]} : vector<16x128xbf16> to vector<16x32xbf16>
    %62 = vector.extract_strided_slice %28 {offsets = [0, 32], sizes = [16, 32], strides = [1, 1]} : vector<16x128xbf16> to vector<16x32xbf16>
    %cst_25 = arith.constant dense<0.000000e+00> : vector<16x16xf32>
    %63 = tpu.matmul %60, %61, %cst_25 {dimension_numbers = #tpu.dot_dimension_numbers<[1], [1], [0], [0], [0, 0, 1, 0], [], []>} : vector<16x32xbf16>, vector<16x32xbf16>, vector<16x16xf32> -> vector<16x16xf32>
    %64 = arith.addf %63, %6 : vector<16x16xf32>
    %cst_26 = arith.constant dense<0xFF800000> : vector<16xf32>
    %65 = vector.multi_reduction <maximumf>, %64, %cst_26 [1] : vector<16x16xf32> to vector<16xf32>
    %66 = vector.shape_cast %65 : vector<16xf32> to vector<16x1xf32>
    %67 = vector.broadcast %66 : vector<16x1xf32> to vector<16x16xf32>
    %68 = arith.subf %64, %67 : vector<16x16xf32>
    %69 = math.exp %68 : vector<16x16xf32>
    %cst_27 = arith.constant dense<0.000000e+00> : vector<16xf32>
    %70 = vector.multi_reduction <add>, %69, %cst_27 [1] : vector<16x16xf32> to vector<16xf32>
    %71 = vector.shape_cast %70 : vector<16xf32> to vector<16x1xf32>
    %72 = vector.broadcast %71 : vector<16x1xf32> to vector<16x16xf32>
    %73 = arith.divf %69, %72 : vector<16x16xf32>
    %74 = arith.truncf %73 : vector<16x16xf32> to vector<16x16xbf16>
    %cst_28 = arith.constant dense<0.000000e+00> : vector<16x32xf32>
    %75 = tpu.matmul %74, %62, %cst_28 {dimension_numbers = #tpu.dot_dimension_numbers<[1], [0], [0], [1], [0, 0, 1, 1], [], []>} : vector<16x16xbf16>, vector<16x32xbf16>, vector<16x32xf32> -> vector<16x32xf32>
    %76 = arith.truncf %75 : vector<16x32xf32> to vector<16x32xbf16>
    %c0_29 = arith.constant 0 : index
    %c32 = arith.constant 32 : index
    %c0_30 = arith.constant 0 : index
    %77 = vector.load %arg8[%c0_29, %c32, %c0_30] : memref<1x128x128xbf16, #tpu.memory_space<vmem>>, vector<1x32x128xbf16>
    %78 = vector.shape_cast %77 : vector<1x32x128xbf16> to vector<32x128xbf16>
    %cst_31 = arith.constant dense<0.000000e+00> : vector<16x128xf32>
    %79 = tpu.matmul %76, %78, %cst_31 {dimension_numbers = #tpu.dot_dimension_numbers<[1], [0], [0], [1], [0, 0, 1, 1], [], []>} : vector<16x32xbf16>, vector<32x128xbf16>, vector<16x128xf32> -> vector<16x128xf32>
    %80 = arith.addf %59, %79 : vector<16x128xf32>
    %81 = vector.extract_strided_slice %34 {offsets = [0, 64], sizes = [16, 32], strides = [1, 1]} : vector<16x128xbf16> to vector<16x32xbf16>
    %82 = vector.extract_strided_slice %38 {offsets = [0, 64], sizes = [16, 32], strides = [1, 1]} : vector<16x128xbf16> to vector<16x32xbf16>
    %83 = vector.extract_strided_slice %28 {offsets = [0, 64], sizes = [16, 32], strides = [1, 1]} : vector<16x128xbf16> to vector<16x32xbf16>
    %cst_32 = arith.constant dense<0.000000e+00> : vector<16x16xf32>
    %84 = tpu.matmul %81, %82, %cst_32 {dimension_numbers = #tpu.dot_dimension_numbers<[1], [1], [0], [0], [0, 0, 1, 0], [], []>} : vector<16x32xbf16>, vector<16x32xbf16>, vector<16x16xf32> -> vector<16x16xf32>
    %85 = arith.addf %84, %6 : vector<16x16xf32>
    %cst_33 = arith.constant dense<0xFF800000> : vector<16xf32>
    %86 = vector.multi_reduction <maximumf>, %85, %cst_33 [1] : vector<16x16xf32> to vector<16xf32>
    %87 = vector.shape_cast %86 : vector<16xf32> to vector<16x1xf32>
    %88 = vector.broadcast %87 : vector<16x1xf32> to vector<16x16xf32>
    %89 = arith.subf %85, %88 : vector<16x16xf32>
    %90 = math.exp %89 : vector<16x16xf32>
    %cst_34 = arith.constant dense<0.000000e+00> : vector<16xf32>
    %91 = vector.multi_reduction <add>, %90, %cst_34 [1] : vector<16x16xf32> to vector<16xf32>
    %92 = vector.shape_cast %91 : vector<16xf32> to vector<16x1xf32>
    %93 = vector.broadcast %92 : vector<16x1xf32> to vector<16x16xf32>
    %94 = arith.divf %90, %93 : vector<16x16xf32>
    %95 = arith.truncf %94 : vector<16x16xf32> to vector<16x16xbf16>
    %cst_35 = arith.constant dense<0.000000e+00> : vector<16x32xf32>
    %96 = tpu.matmul %95, %83, %cst_35 {dimension_numbers = #tpu.dot_dimension_numbers<[1], [0], [0], [1], [0, 0, 1, 1], [], []>} : vector<16x16xbf16>, vector<16x32xbf16>, vector<16x32xf32> -> vector<16x32xf32>
    %97 = arith.truncf %96 : vector<16x32xf32> to vector<16x32xbf16>
    %c0_36 = arith.constant 0 : index
    %c64 = arith.constant 64 : index
    %c0_37 = arith.constant 0 : index
    %98 = vector.load %arg8[%c0_36, %c64, %c0_37] : memref<1x128x128xbf16, #tpu.memory_space<vmem>>, vector<1x32x128xbf16>
    %99 = vector.shape_cast %98 : vector<1x32x128xbf16> to vector<32x128xbf16>
    %cst_38 = arith.constant dense<0.000000e+00> : vector<16x128xf32>
    %100 = tpu.matmul %97, %99, %cst_38 {dimension_numbers = #tpu.dot_dimension_numbers<[1], [0], [0], [1], [0, 0, 1, 1], [], []>} : vector<16x32xbf16>, vector<32x128xbf16>, vector<16x128xf32> -> vector<16x128xf32>
    %101 = arith.addf %80, %100 : vector<16x128xf32>
    %102 = vector.extract_strided_slice %34 {offsets = [0, 96], sizes = [16, 32], strides = [1, 1]} : vector<16x128xbf16> to vector<16x32xbf16>
    %103 = vector.extract_strided_slice %38 {offsets = [0, 96], sizes = [16, 32], strides = [1, 1]} : vector<16x128xbf16> to vector<16x32xbf16>
    %104 = vector.extract_strided_slice %28 {offsets = [0, 96], sizes = [16, 32], strides = [1, 1]} : vector<16x128xbf16> to vector<16x32xbf16>
    %cst_39 = arith.constant dense<0.000000e+00> : vector<16x16xf32>
    %105 = tpu.matmul %102, %103, %cst_39 {dimension_numbers = #tpu.dot_dimension_numbers<[1], [1], [0], [0], [0, 0, 1, 0], [], []>} : vector<16x32xbf16>, vector<16x32xbf16>, vector<16x16xf32> -> vector<16x16xf32>
    %106 = arith.addf %105, %6 : vector<16x16xf32>
    %cst_40 = arith.constant dense<0xFF800000> : vector<16xf32>
    %107 = vector.multi_reduction <maximumf>, %106, %cst_40 [1] : vector<16x16xf32> to vector<16xf32>
    %108 = vector.shape_cast %107 : vector<16xf32> to vector<16x1xf32>
    %109 = vector.broadcast %108 : vector<16x1xf32> to vector<16x16xf32>
    %110 = arith.subf %106, %109 : vector<16x16xf32>
    %111 = math.exp %110 : vector<16x16xf32>
    %cst_41 = arith.constant dense<0.000000e+00> : vector<16xf32>
    %112 = vector.multi_reduction <add>, %111, %cst_41 [1] : vector<16x16xf32> to vector<16xf32>
    %113 = vector.shape_cast %112 : vector<16xf32> to vector<16x1xf32>
    %114 = vector.broadcast %113 : vector<16x1xf32> to vector<16x16xf32>
    %115 = arith.divf %111, %114 : vector<16x16xf32>
    %116 = arith.truncf %115 : vector<16x16xf32> to vector<16x16xbf16>
    %cst_42 = arith.constant dense<0.000000e+00> : vector<16x32xf32>
    %117 = tpu.matmul %116, %104, %cst_42 {dimension_numbers = #tpu.dot_dimension_numbers<[1], [0], [0], [1], [0, 0, 1, 1], [], []>} : vector<16x16xbf16>, vector<16x32xbf16>, vector<16x32xf32> -> vector<16x32xf32>
    %118 = arith.truncf %117 : vector<16x32xf32> to vector<16x32xbf16>
    %c0_43 = arith.constant 0 : index
    %c96 = arith.constant 96 : index
    %c0_44 = arith.constant 0 : index
    %119 = vector.load %arg8[%c0_43, %c96, %c0_44] : memref<1x128x128xbf16, #tpu.memory_space<vmem>>, vector<1x32x128xbf16>
    %120 = vector.shape_cast %119 : vector<1x32x128xbf16> to vector<32x128xbf16>
    %cst_45 = arith.constant dense<0.000000e+00> : vector<16x128xf32>
    %121 = tpu.matmul %118, %120, %cst_45 {dimension_numbers = #tpu.dot_dimension_numbers<[1], [0], [0], [1], [0, 0, 1, 1], [], []>} : vector<16x32xbf16>, vector<32x128xbf16>, vector<16x128xf32> -> vector<16x128xf32>
    %122 = arith.addf %101, %121 : vector<16x128xf32>
    %c0_46 = arith.constant 0 : index
    %c0_47 = arith.constant 0 : index
    %c0_48 = arith.constant 0 : index
    %123 = vector.load %arg9[%c0_46, %c0_47, %c0_48] : memref<1x1x128xf32, #tpu.memory_space<vmem>>, vector<1x1x128xf32>
    %124 = vector.shape_cast %123 : vector<1x1x128xf32> to vector<1x128xf32>
    %125 = arith.mulf %122, %122 : vector<16x128xf32>
    %cst_49 = arith.constant dense<0.000000e+00> : vector<16xf32>
    %126 = vector.multi_reduction <add>, %125, %cst_49 [1] : vector<16x128xf32> to vector<16xf32>
    %127 = vector.shape_cast %126 : vector<16xf32> to vector<16x1xf32>
    %cst_50 = arith.constant 1.280000e+02 : f32
    %128 = vector.broadcast %cst_50 : f32 to vector<16x1xf32>
    %129 = arith.divf %127, %128 : vector<16x1xf32>
    %cst_51 = arith.constant 9.99999997E-7 : f32
    %130 = vector.broadcast %cst_51 : f32 to vector<16x1xf32>
    %131 = arith.addf %129, %130 : vector<16x1xf32>
    %132 = math.rsqrt %131 : vector<16x1xf32>
    %133 = vector.broadcast %132 : vector<16x1xf32> to vector<16x128xf32>
    %134 = arith.mulf %122, %133 : vector<16x128xf32>
    %135 = vector.broadcast %124 : vector<1x128xf32> to vector<16x128xf32>
    %136 = arith.mulf %134, %135 : vector<16x128xf32>
    %137 = arith.truncf %136 : vector<16x128xf32> to vector<16x128xbf16>
    %c0_52 = arith.constant 0 : index
    %c0_53 = arith.constant 0 : index
    %c0_54 = arith.constant 0 : index
    %138 = vector.load %arg10[%c0_52, %c0_53, %c0_54] : memref<1x128x512xbf16, #tpu.memory_space<vmem>>, vector<1x128x512xbf16>
    %139 = vector.shape_cast %138 : vector<1x128x512xbf16> to vector<128x512xbf16>
    %cst_55 = arith.constant dense<0.000000e+00> : vector<16x512xf32>
    %140 = tpu.matmul %137, %139, %cst_55 {dimension_numbers = #tpu.dot_dimension_numbers<[1], [0], [0], [1], [0, 0, 1, 1], [], []>} : vector<16x128xbf16>, vector<128x512xbf16>, vector<16x512xf32> -> vector<16x512xf32>
    %141 = vector.extract_strided_slice %140 {offsets = [0, 0], sizes = [16, 256], strides = [1, 1]} : vector<16x512xf32> to vector<16x256xf32>
    %142 = vector.extract_strided_slice %140 {offsets = [0, 256], sizes = [16, 256], strides = [1, 1]} : vector<16x512xf32> to vector<16x256xf32>
    %143 = arith.negf %141 : vector<16x256xf32>
    %144 = math.exp %143 : vector<16x256xf32>
    %cst_56 = arith.constant 1.000000e+00 : f32
    %145 = vector.broadcast %cst_56 : f32 to vector<16x256xf32>
    %146 = arith.addf %145, %144 : vector<16x256xf32>
    %147 = arith.divf %145, %146 : vector<16x256xf32>
    %148 = arith.mulf %141, %147 : vector<16x256xf32>
    %149 = arith.mulf %148, %142 : vector<16x256xf32>
    %150 = arith.truncf %149 : vector<16x256xf32> to vector<16x256xbf16>
    %c0_57 = arith.constant 0 : index
    %c0_58 = arith.constant 0 : index
    %c0_59 = arith.constant 0 : index
    %151 = vector.load %arg11[%c0_57, %c0_58, %c0_59] : memref<1x256x128xbf16, #tpu.memory_space<vmem>>, vector<1x256x128xbf16>
    %152 = vector.shape_cast %151 : vector<1x256x128xbf16> to vector<256x128xbf16>
    %cst_60 = arith.constant dense<0.000000e+00> : vector<16x128xf32>
    %153 = tpu.matmul %150, %152, %cst_60 {dimension_numbers = #tpu.dot_dimension_numbers<[1], [0], [0], [1], [0, 0, 1, 1], [], []>} : vector<16x256xbf16>, vector<256x128xbf16>, vector<16x128xf32> -> vector<16x128xf32>
    %154 = arith.addf %122, %153 : vector<16x128xf32>
    %c0_61 = arith.constant 0 : index
    %c0_62 = arith.constant 0 : index
    %155 = vector.load %arg15[%c0_61, %c0_62] : memref<16x128xf32, #tpu.memory_space<vmem>>, vector<16x128xf32>
    tpu.vector_store %arg15[%c0_61, %c0_62], %154 {strides = array<i32>} : memref<16x128xf32, #tpu.memory_space<vmem>>, vector<16x128xf32>,
    %c1_i32 = arith.constant 1 : i32
    %156 = arith.cmpi eq, %arg1, %c1_i32 : i32
    %157 = arith.extui %156 : i1 to i32
    %c0_i32_63 = arith.constant 0 : i32
    %158 = arith.cmpi ne, %157, %c0_i32_63 : i32
    scf.if %158 {
      %c0_64 = arith.constant 0 : index
      %c0_65 = arith.constant 0 : index
      %159 = vector.load %arg12[%c0_64, %c0_65] : memref<1x128xf32, #tpu.memory_space<vmem>>, vector<1x128xf32>
      %160 = arith.mulf %154, %154 : vector<16x128xf32>
      %cst_66 = arith.constant dense<0.000000e+00> : vector<16xf32>
      %161 = vector.multi_reduction <add>, %160, %cst_66 [1] : vector<16x128xf32> to vector<16xf32>
      %162 = vector.shape_cast %161 : vector<16xf32> to vector<16x1xf32>
      %cst_67 = arith.constant 1.280000e+02 : f32
      %163 = vector.broadcast %cst_67 : f32 to vector<16x1xf32>
      %164 = arith.divf %162, %163 : vector<16x1xf32>
      %cst_68 = arith.constant 9.99999997E-7 : f32
      %165 = vector.broadcast %cst_68 : f32 to vector<16x1xf32>
      %166 = arith.addf %164, %165 : vector<16x1xf32>
      %167 = math.rsqrt %166 : vector<16x1xf32>
      %168 = vector.broadcast %167 : vector<16x1xf32> to vector<16x128xf32>
      %169 = arith.mulf %154, %168 : vector<16x128xf32>
      %170 = vector.broadcast %159 : vector<1x128xf32> to vector<16x128xf32>
      %171 = arith.mulf %169, %170 : vector<16x128xf32>
      %172 = arith.truncf %171 : vector<16x128xf32> to vector<16x128xbf16>
      %c0_69 = arith.constant 0 : index
      %c0_70 = arith.constant 0 : index
      %173 = vector.load %arg13[%c0_69, %c0_70] : memref<128x256xbf16, #tpu.memory_space<vmem>>, vector<128x256xbf16>
      %cst_71 = arith.constant dense<0.000000e+00> : vector<16x256xf32>
      %174 = tpu.matmul %172, %173, %cst_71 {dimension_numbers = #tpu.dot_dimension_numbers<[1], [0], [0], [1], [0, 0, 1, 1], [], []>} : vector<16x128xbf16>, vector<128x256xbf16>, vector<16x256xf32> -> vector<16x256xf32>
      %c0_72 = arith.constant 0 : index
      %c0_73 = arith.constant 0 : index
      %175 = vector.load %arg14[%c0_72, %c0_73] : memref<16x256xf32, #tpu.memory_space<vmem>>, vector<16x256xf32>
      tpu.vector_store %arg14[%c0_72, %c0_73], %174 {strides = array<i32>} : memref<16x256xf32, #tpu.memory_space<vmem>>, vector<16x256xf32>,
    } else {
    }
    return
  }
  func.func @transform_0(%arg0: i32, %arg1: i32) -> (i32, i32) {
    %c0_i32 = arith.constant 0 : i32
    %c0_i32_0 = arith.constant 0 : i32
    return %arg0, %c0_i32 : i32, i32
  }
  func.func @transform_1(%arg0: i32, %arg1: i32) -> (i32, i32) {
    %c0_i32 = arith.constant 0 : i32
    %c0_i32_0 = arith.constant 0 : i32
    %c0_i32_1 = arith.constant 0 : i32
    return %c0_i32, %c0_i32_0 : i32, i32
  }
  func.func @transform_2(%arg0: i32, %arg1: i32) -> (i32, i32) {
    %c0_i32 = arith.constant 0 : i32
    %c0_i32_0 = arith.constant 0 : i32
    %c0_i32_1 = arith.constant 0 : i32
    return %c0_i32, %c0_i32_0 : i32, i32
  }
  func.func @transform_3(%arg0: i32, %arg1: i32) -> (i32, i32) {
    %c0_i32 = arith.constant 0 : i32
    %c0_i32_0 = arith.constant 0 : i32
    %c0_i32_1 = arith.constant 0 : i32
    return %c0_i32, %c0_i32_0 : i32, i32
  }
  func.func @transform_4(%arg0: i32, %arg1: i32) -> (i32, i32, i32) {
    %c0_i32 = arith.constant 0 : i32
    %c0_i32_0 = arith.constant 0 : i32
    %c0_i32_1 = arith.constant 0 : i32
    return %arg1, %c0_i32, %c0_i32_0 : i32, i32, i32
  }
  func.func @transform_5(%arg0: i32, %arg1: i32) -> (i32, i32, i32) {
    %c0_i32 = arith.constant 0 : i32
    %c0_i32_0 = arith.constant 0 : i32
    %c0_i32_1 = arith.constant 0 : i32
    return %arg1, %c0_i32, %c0_i32_0 : i32, i32, i32
  }
  func.func @transform_6(%arg0: i32, %arg1: i32) -> (i32, i32, i32) {
    %c0_i32 = arith.constant 0 : i32
    %c0_i32_0 = arith.constant 0 : i32
    %c0_i32_1 = arith.constant 0 : i32
    return %arg1, %c0_i32, %c0_i32_0 : i32, i32, i32
  }
  func.func @transform_7(%arg0: i32, %arg1: i32) -> (i32, i32, i32) {
    %c0_i32 = arith.constant 0 : i32
    %c0_i32_0 = arith.constant 0 : i32
    %c0_i32_1 = arith.constant 0 : i32
    return %arg1, %c0_i32, %c0_i32_0 : i32, i32, i32
  }
  func.func @transform_8(%arg0: i32, %arg1: i32) -> (i32, i32, i32) {
    %c0_i32 = arith.constant 0 : i32
    %c0_i32_0 = arith.constant 0 : i32
    %c0_i32_1 = arith.constant 0 : i32
    return %arg1, %c0_i32, %c0_i32_0 : i32, i32, i32
  }
  func.func @transform_9(%arg0: i32, %arg1: i32) -> (i32, i32, i32) {
    %c0_i32 = arith.constant 0 : i32
    %c0_i32_0 = arith.constant 0 : i32
    %c0_i32_1 = arith.constant 0 : i32
    return %arg1, %c0_i32, %c0_i32_0 : i32, i32, i32
  }
  func.func @transform_10(%arg0: i32, %arg1: i32) -> (i32, i32) {
    %c0_i32 = arith.constant 0 : i32
    %c0_i32_0 = arith.constant 0 : i32
    %c0_i32_1 = arith.constant 0 : i32
    return %c0_i32, %c0_i32_0 : i32, i32
  }
  func.func @transform_11(%arg0: i32, %arg1: i32) -> (i32, i32) {
    %c0_i32 = arith.constant 0 : i32
    %c0_i32_0 = arith.constant 0 : i32
    %c0_i32_1 = arith.constant 0 : i32
    return %c0_i32, %c0_i32_0 : i32, i32
  }
  func.func @transform_12(%arg0: i32, %arg1: i32) -> (i32, i32) {
    %c0_i32 = arith.constant 0 : i32
    %c0_i32_0 = arith.constant 0 : i32
    return %arg0, %c0_i32 : i32, i32
  }
}

</mosaic_0001>

<bundles_post_ra>
// kernel: tile.14
= control target key start
LH: loop header
LB: loop body
LE: loop exit
PB: predicated region body
PF: predicated region fallthrough
CT: control target
= control target key end

     0   :  { %vm82_vm0 = vcmask 1047556   ;;  %vm84_vm1 = vcmask 261120   ;;  %s195_s9 = smov 96   ;;  %s196_s14 = smov 32   ;;  %vm103_vm2 = vcmask 1048320   ;;  %vm124_vm3 = vcmask 785920   ;;  %s289_s0 = inlined_call_operand.vmem [shape: f32[16,4,32], index: 0, kind: input, shape index: {}]   ;;  %s290_s1 = inlined_call_operand.vmem [shape: f32[16,128], index: 1, kind: output, shape index: {}]  }
   0x1   :  { %v180_v0 = vld [vmem:[%s289_s0 + $0x1c] sm:$0xf]  ;;  %v181_v1 = vld [vmem:[%s289_s0 + $0x18] sm:$0xf]  ;;  %v182_v2 = vld [vmem:[%s289_s0 + $0x14] sm:$0xf] }
   0x2   :  { %48 = vst [vmem:[#allocation0 + $0x38] sm:$0xf] %v180_v0  ;;  %53 = vst [vmem:[#allocation0 + $0x30] sm:$0xf] %v181_v1  ;;  %v183_v3 = vld [vmem:[%s289_s0 + $0x10] sm:$0xf] }
   0x3   :  { %58 = vst [vmem:[#allocation0 + $0x28] sm:$0xf] %v182_v2  ;;  %v184_v4 = vld [vmem:[%s289_s0 + $0xc] sm:$0xf]  ;;  %v185_v5 = vld [vmem:[%s289_s0 + $0x8] sm:$0xf] }
   0x4   :  { %63 = vst [vmem:[#allocation0 + $0x20] sm:$0xf] %v183_v3  ;;  %68 = vst [vmem:[#allocation0 + $0x18] sm:$0xf] %v184_v4  ;;  %v186_v6 = vld [vmem:[%s289_s0 + $0x4] sm:$0xf] }
   0x5   :  { %73 = vst [vmem:[#allocation0 + $0x10] sm:$0xf] %v185_v5  ;;  %v78_v7 = vld [vmem:[%s289_s0] sm:$0xf]  ;;  %77 = vst [vmem:[#allocation0 + $0x8] sm:$0xf] %v186_v6 }
   0x6   :  { %79 = vst [vmem:[#allocation0] sm:$0xf] %v78_v7  ;;  %v172_v8 = vld [vmem:[%s289_s0 + $0x3c] sm:$0xf]  ;;  %v173_v9 = vld [vmem:[%s289_s0 + $0x38] sm:$0xf] }
   0x7   :  { %8 = vst [vmem:[#allocation0 + $0x78] sm:$0xf] %v172_v8  ;;  %13 = vst [vmem:[#allocation0 + $0x70] sm:$0xf] %v173_v9  ;;  %v174_v10 = vld [vmem:[%s289_s0 + $0x34] sm:$0xf] }
   0x8   :  { %v175_v11 = vld [vmem:[%s289_s0 + $0x30] sm:$0xf]  ;;  %v176_v12 = vld [vmem:[%s289_s0 + $0x2c] sm:$0xf]  ;;  %18 = vst [vmem:[#allocation0 + $0x68] sm:$0xf] %v174_v10 }
   0x9   :  { %23 = vst [vmem:[#allocation0 + $0x60] sm:$0xf] %v175_v11  ;;  %28 = vst [vmem:[#allocation0 + $0x58] sm:$0xf] %v176_v12  ;;  %v177_v13 = vld [vmem:[%s289_s0 + $0x28] sm:$0xf] }
   0xa   :  { %v178_v14 = vld [vmem:[%s289_s0 + $0x24] sm:$0xf]  ;;  %v179_v15 = vld [vmem:[%s289_s0 + $0x20] sm:$0xf]  ;;  %33 = vst [vmem:[#allocation0 + $0x50] sm:$0xf] %v177_v13 }
   0xb   :  { %38 = vst [vmem:[#allocation0 + $0x48] sm:$0xf] %v178_v14  ;;  %43 = vst [vmem:[#allocation0 + $0x40] sm:$0xf] %v179_v15  ;;  %s194_s0 = smov 64   ;;  %vm145_vm4 = vcmask 523520  }
   0xc   :  { %v119_v16 = vld [vmem:[#allocation0 + $0x2] ss:$8 sm:$0xf0]   ;;  %v98_v17 = vld [vmem:[#allocation0 + $0x3] ss:$8 sm:$0xf0]  }
   0xd   :  { %v117_v18 = vld [vmem:[#allocation0 + $0x2] ss:$8 sm:$0xf]   ;;  %v96_v19 = vld [vmem:[#allocation0 + $0x3] ss:$8 sm:$0xf]  }
   0xe   :  { %v121_v20 = vsel %vm82_vm0, %v119_v16, %v117_v18  ;;  %v100_v21 = vsel %vm82_vm0, %v98_v17, %v96_v19  ;;  %v138_v24 = vld [vmem:[#allocation0 + $0x1] ss:$8 sm:$0xf]   ;;  %v80_v32 = vld [vmem:[#allocation0] ss:$8 sm:$0xf]  }
   0xf   :  { %122 = vrot.lane.b32.xlu1 %v121_v20, %s194_s0  ;;  %101 = vrot.lane.b32.xlu0 %v100_v21, %s195_s9  ;;  %v140_v25 = vld [vmem:[#allocation0 + $0x1] ss:$8 sm:$0xf0]   ;;  %v81_v33 = vld [vmem:[#allocation0] ss:$8 sm:$0xf0]  }
  0x10   :  { %v129_v22 = vld [vmem:[#allocation0 + $0x42] ss:$8 sm:$0xf0]   ;;  %v108_v23 = vld [vmem:[#allocation0 + $0x43] ss:$8 sm:$0xf0]   ;;  %v83_v34 = vsel %vm82_vm0, %v81_v33, %v80_v32  ;;  %v142_v38 = vsel %vm82_vm0, %v140_v25, %v138_v24 }
  0x11   :  { %v150_v31 = vld [vmem:[#allocation0 + $0x41] ss:$8 sm:$0xf0]   ;;  %v89_v36 = vld [vmem:[#allocation0 + $0x40] ss:$8 sm:$0xf0]  }
  0x12   :  { %v127_v26 = vld [vmem:[#allocation0 + $0x42] ss:$8 sm:$0xf]   ;;  %v106_v27 = vld [vmem:[#allocation0 + $0x43] ss:$8 sm:$0xf]  }
  0x13   :  { %v131_v28 = vsel %vm82_vm0, %v129_v22, %v127_v26  ;;  %v110_v29 = vsel %vm82_vm0, %v108_v23, %v106_v27  ;;  %v148_v30 = vld [vmem:[#allocation0 + $0x41] ss:$8 sm:$0xf]   ;;  %v87_v35 = vld [vmem:[#allocation0 + $0x40] ss:$8 sm:$0xf]  }
  0x14   :  { %132 = vrot.lane.b32.xlu1 %v131_v28, %s194_s0  ;;  %111 = vrot.lane.b32.xlu0 %v110_v29, %s195_s9  ;;  %v152_v37 = vsel %vm82_vm0, %v150_v31, %v148_v30  ;;  %85 = vst.msk [vmem:[%s290_s1] sm:$0xff] %vm84_vm1, %v83_v34   ;;  %v91_v39 = vsel %vm82_vm0, %v89_v36, %v87_v35 }
  0x15   :  { %187 = vst.msk [vmem:[%s290_s1 + $0x8] sm:$0xff] %vm84_vm1, %v91_v39  }
  0x18   :  { %153 = vrot.lane.b32.xlu1 %v152_v37, %s196_s14  ;;  %143 = vrot.lane.b32.xlu0 %v142_v38, %s196_s14 }
  0x81   :  { %v123_v40 = vpop.permute.xlu1 %122   ;;  %v102_v41 = vpop.permute.xlu0 %101  }
  0x82   :  { %104 = vst.msk [vmem:[%s290_s1] sm:$0xff] %vm103_vm2, %v102_v41  }
  0x83   :  { %125 = vst.msk [vmem:[%s290_s1] sm:$0xff] %vm124_vm3, %v123_v40  }
  0x86   :  { %v133_v42 = vpop.permute.xlu1 %132   ;;  %v112_v43 = vpop.permute.xlu0 %111  }
  0x87   :  { %188 = vst.msk [vmem:[%s290_s1 + $0x8] sm:$0xff] %vm103_vm2, %v112_v43  }
  0x88   :  { %189 = vst.msk [vmem:[%s290_s1 + $0x8] sm:$0xff] %vm124_vm3, %v133_v42  }
  0x8a   :  { %v154_v44 = vpop.permute.xlu1 %153   ;;  %v144_v45 = vpop.permute.xlu0 %143  }
  0x8b   :  { %190 = vst.msk [vmem:[%s290_s1 + $0x8] sm:$0xff] %vm145_vm4, %v154_v44   ;;  %146 = vst.msk [vmem:[%s290_s1] sm:$0xff] %vm145_vm4, %v144_v45  }

// kernel: forward.1
= control target key start
LH: loop header
LB: loop body
LE: loop exit
PB: predicated region body
PF: predicated region fallthrough
CT: control target
= control target key end

     0   :  { %s4242_s0 = inlined_call_operand.vmem [shape: f32[32,128], index: 0, kind: input, shape index: {}]   ;;  %s4243_s1 = inlined_call_operand.vmem [shape: f32[16,128], index: 1, kind: input, shape index: {}]   ;;  %s4244_s2 = inlined_call_operand.vmem [shape: f32[16,128], index: 2, kind: input, shape index: {}]   ;;  %s4245_s3 = inlined_call_operand.vmem [shape: f32[16,16], index: 3, kind: input, shape index: {}]   ;;  %s4246_s4 = inlined_call_operand.vmem [shape: f32[2,1,128], index: 4, kind: input, shape index: {}]   ;;  %s4247_s5 = inlined_call_operand.vmem [shape: bf16[2,128,640], index: 5, kind: input, shape index: {}]   ;;  %s4248_s6 = inlined_call_operand.vmem [shape: bf16[2,128,128], index: 6, kind: input, shape index: {}]   ;;  %s4249_s7 = inlined_call_operand.vmem [shape: f32[2,1,128], index: 7, kind: input, shape index: {}]   ;;  %s4250_s8 = inlined_call_operand.hbm [shape: bf16[2,128,512], index: 8, kind: input, shape index: {}]   ;;  %s4251_s9 = inlined_call_operand.hbm [shape: bf16[2,256,128], index: 9, kind: input, shape index: {}]   ;;  %s4252_s10 = inlined_call_operand.vmem [shape: f32[1,128], index: 10, kind: input, shape index: {}]   ;;  %s4253_s11 = inlined_call_operand.hbm [shape: bf16[128,256], index: 11, kind: input, shape index: {}]   ;;  %s4254_s12 = inlined_call_operand.hbm [shape: f32[32,256], index: 12, kind: output, shape index: {}]  }
   0x1   :  { %4274 = sst [smem:[#allocation25_spill]] %s4243_s1 }
   0x2   :  { %4275 = sst [smem:[#allocation26_spill]] %s4244_s2 }
   0x3   :  { %4276 = sst [smem:[#allocation27_spill]] %s4245_s3 }
   0x4   :  { %4277 = sst [smem:[#allocation28_spill]] %s4247_s5 }
   0x5   :  { %4278 = sst [smem:[#allocation29_spill]] %s4250_s8 }
   0x6   :  { %4279 = sst [smem:[#allocation30_spill]] %s4251_s9 }
   0x7   :  { %4280 = sst [smem:[#allocation31_spill]] %s4252_s10 }
   0x8   :  { %4281 = sst [smem:[#allocation32_spill]] %s4253_s11 }
   0x9   :  { %4282 = sst [smem:[#allocation33_spill]] %s4254_s12 }
   0xa   :  { %17 = vsyncpa [#allocation4], 0 }
   0xb   :  { %19 = vsyncpa [#allocation4 + $0x1], 0 }
   0xc   :  { %20 = vsyncpa [#allocation7], 0 }
   0xd   :  { %22 = vsyncpa [#allocation7 + $0x1], 0 }
   0xe   :  { %23 = vsyncpa [#allocation5], 0 }
   0xf   :  { %25 = vsyncpa [#allocation5 + $0x1], 0  ;;  %s3618_s21 = smov 0   ;;  %s3620_s22 = smov 0  }
  0x10   :  { %s3622_s23 = smov 0   ;;  %s3624_s24 = smov 0  }
  0x11   :  { %s3626_s25 = smov 0   ;;  %s3628_s26 = smov 0  }
  0x12   :  { %s3630_s27 = smov 0   ;;  %s3632_s28 = smov 0  }
  0x13   :  { %s3634_s29 = smov 0   ;;  %s3636_s30 = smov 0  }
  0x14   :  { %s3638_s13 = smov 0  }
  0x15 LB: > { %4283 = sst [smem:[#allocation14_spill]] %s3492_s21  ;;  %s3672_s14 = sadd.s32 4294967295, %s3532_s13   ;;  %s3532_s13 = sphi %s3638_s13, %s31_s13   ;;  %s3528_s30 = sphi %s3636_s30, %s4329_s30   ;;  %s3524_s29 = sphi %s3634_s29, %s4328_s29   ;;  %s3520_s28 = sphi %s3632_s28, %s4327_s28   ;;  %s3516_s27 = sphi %s3630_s27, %s4326_s27   ;;  %s3512_s26 = sphi %s3628_s26, %s4325_s26   ;;  %s3508_s25 = sphi %s3626_s25, %s4333_s25   ;;  %s3504_s24 = sphi %s3624_s24, %s4332_s24   ;;  %s3500_s23 = sphi %s3622_s23, %s4323_s23   ;;  %s3496_s22 = sphi %s3620_s22, %s4331_s22   ;;  %s3492_s21 = sphi %s3618_s21, %s4330_s21  }
  0x16   : > { %4284 = sst [smem:[#allocation15_spill]] %s3500_s23  ;;  %s2629_s15 = sadd.s32 4294967294, %s3532_s13  }
  0x17   : > { %4285 = sst [smem:[#allocation16_spill]] %s3512_s26  ;;  %p256_p0 = scmp.ne.s32.totalorder %s3508_s25, %s3504_s24 }
  0x18   : > { %4286 = sst [smem:[#allocation17_spill]] %s3524_s29  ;;  %p4262_p1 = scmp.eq.s32.totalorder %s3672_s14, 0 }
  0x19   : > { %4287 = sst [smem:[#allocation18_spill]] %s3528_s30  ;;  %p347_p2 = scmp.ne.s32.totalorder %s3500_s23, %s3496_s22 }
  0x1a   : > { %p3682_p3 = por %p4262_p1, %p256_p0  ;;  %p348_p4 = scmp.eq.s32.totalorder %s3672_s14, 3 }
  0x1b   : > { %p353_p5 = scmp.ne.s32.totalorder %s3496_s22, %s3492_s21  ;;  %p354_p6 = scmp.eq.s32.totalorder %s2629_s15, 3 }
  0x1c   : > { %s4288_s17 = scalar_select %p3682_p3, 1, 0 }
  0x1d   : > { %p3689_p7 = por %p348_p4, %p347_p2  ;;  %p2630_p8 = scmp.ge.s32.totalorder %s3532_s13, 1 }
  0x1e   : > { %p3694_p9 = por %p354_p6, %p353_p5  ;;  %p361_p10 = scmp.lt.s32.totalorder %s3532_s13, 5 }
  0x1f   : > { %s4289_s18 = scalar_select %p3689_p7, 1, 0 }
  0x20   : > { %s4291_s19 = scalar_select %p3694_p9, 1, 0 }
  0x21   : > { %4290 = sst [smem:[#allocation19_spill]] %s4289_s18  ;;  %p3699_p11 = pnand %p2630_p8, %p361_p10 }
  0x22   : > { %4292 = sst [smem:[#allocation20_spill]] %s4291_s19  ;;  %s3534_s24 = smov [#allocation8]  }
  0x23   : > { %s4293_s20 = scalar_select %p3699_p11, 1, 0 }
  0x24   : > { %s385_s16 = sshll.u32 %s3534_s24, 4  ;;  %p2977_p12 = pneg %p3699_p11  ;;  %s386_s16 = int_to_ptr.vmem [resolvable:$true] %s385_s16 }
  0x25   : > { %s4295_s11 = sld [smem:[#allocation32_spill]] }
  0x26   : > { %p3707_p13 = pnand %p2977_p12, %p4262_p1 }
  0x28   : > { %p3316_p2 = pneg %p3707_p13 }
  0x2b   : > { %s3314_s19 = scalar_lea.hbm %s4295_s11, 2048 }
  0x2c   : > { %p3315_p0 = scmp.ne.s32.totalorder %s4295_s11, %s3314_s19  ;;  %p3321_p6 = scmp.lt.u32.totalorder %s3314_s19, %s4295_s11 }
  0x2e   : > { %p3317_p4 = pnand %p3316_p2, %p3315_p0 }
  0x30   : > { %p3318_p5 = pneg %p3317_p4 }
  0x32   : > { %p3323_p8 = pnand %p3321_p6, %p3318_p5 }
  0x34   : > { %3326 = shalt.err (!%p3323_p8)
}
  0x35   : > { %s3327_s2 = scalar_lea.vmem %s386_s16, 2048  ;;  %p3335_p9 = scmp.lt.s32.totalorder %s386_s16, %s386_s16 }
  0x36   : > { %p3328_p10 = scmp.ne.s32.totalorder %s386_s16, %s3327_s2  ;;  %p3336_p7 = scmp.lt.s32.totalorder %s3327_s2, %s3327_s2 }
  0x38   : > { %p3330_p12 = pnand %p3328_p10, %p3316_p2  ;;  %p3337_p3 = por %p3336_p7, %p3335_p9 }
  0x3a   : > { %p3331_p1 = pneg %p3330_p12 }
  0x3c   : > { %p3338_p11 = pnand %p3337_p3, %p3331_p1 }
  0x3e   : > { %3341 = shalt.err (!%p3338_p11)
}
  0x3f   : > { %s3535_s10 = smov 128   ;;  %s3536_s3 = smov 8  }
  0x40   : > { %2980 = dma.hbm_to_vmem [thread:$0]  (!%p3707_p13), %s4295_s11, 2048, %s386_s16, [#allocation7], %s3535_s10, %s3535_s10, %s3536_s3  }
  0x41   : > { %s40_s2 = sadd.s32 1, %s3524_s29  ;;  %s43_s18 = sadd.s32 1, %s3528_s30 }
  0x42   : > { %p41_p1 = scmp.ge.s32.totalorder %s40_s2, 2  ;;  %s243_s19 = sadd.s32 1, %s3512_s26 }
  0x43   : > { %p250_p3 = scmp.ne.s32.totalorder %s3512_s26, %s3508_s25  ;;  %p251_p7 = scmp.eq.s32.totalorder %s3532_s13, 0 }
  0x44   : > { %s4335_s2 = smov (%p41_p1, %s40_s2), 0  ;;  %s4337_s18 = smov (!%p41_p1, %s43_s18), %s3528_s30 }
  0x45   : > { %4296 = sst [smem:[#allocation21_spill]] %s4335_s2  ;;  %s240_s15 = ssub.s32 %s3524_s29, %s4335_s2 }
  0x46   : > { %p45_p9 = scmp.ge.s32.totalorder %s4337_s18, 2  ;;  %p241_p11 = scmp.eq.s32.totalorder %s240_s15, 0 }
  0x47   : > { %p3738_p0 = por %p251_p7, %p250_p3  ;;  %p2993_p13 = scmp.lt.s32.totalorder %s3532_s13, 4 }
  0x48   : > { %s4339_s18 = smov (%p45_p9, %s4337_s18), 0  ;;  %s3751_s3 = sand.u32 1, %s3512_s26  }
  0x49   : > { %4298 = sst [smem:[#allocation22_spill]] %s4339_s18  ;;  %s334_s10 = ssub.s32 %s3528_s30, %s4339_s18 }
  0x4a   : > { %s3746_s24 = scalar_select %p241_p11, %s3512_s26, %s243_s19  }
  0x4b   : > { %p335_p2 = scmp.eq.s32.totalorder %s334_s10, 0  ;;  %s2633_s12 = sshll.u32 %s3751_s3, 8 }
  0x4c   : > { %4299 = sst [smem:[#allocation23_spill]] %s3746_s24  ;;  %s2788_s21 = sshll.u32 %s3524_s29, 12 }
  0x4d   : > { %s4300_s15 = sadd.s32 1, %s3500_s23  ;;  %s4302_s8 = sld [smem:[#allocation29_spill]] }
  0x4e   : > { %s3758_s11 = scalar_select %p335_p2, %s3500_s23, %s4300_s15  }
  0x4f   : > { %s440_s19 = scalar_lea.vmem [#allocation3], %s2633_s12  ;;  %p3767_p4 = pnand %p2993_p13, %p3738_p0 }
  0x50   : > { %4301 = sst [smem:[#allocation24_spill]] %s3758_s11  ;;  %s447_s18 = sshll.u32 %s440_s19, 4  ;;  %s3771_s18 = int_to_ptr.vmem [resolvable:$true] %s447_s18 }
  0x51   : > { %s437_s10 = scalar_lea.sflag [#allocation4], %s3751_s3  ;;  %p3344_p6 = pneg %p3767_p4 }
  0x53   : > { %s3763_s5 = scalar_lea.hbm %s4302_s8, %s2788_s21  ;;  %s3347_s16 = scalar_lea.hbm %s4302_s8, 8192 }
  0x54   : > { %s3342_s15 = scalar_lea.hbm %s3763_s5, 4096  ;;  %p3348_p12 = scmp.lt.u32.totalorder %s3763_s5, %s4302_s8 }
  0x55   : > { %p3343_p5 = scmp.ne.s32.totalorder %s3763_s5, %s3342_s15  ;;  %p3349_p1 = scmp.lt.u32.totalorder %s3347_s16, %s3342_s15 }
  0x56   : > { %p3351_p7 = scmp.lt.u32.totalorder %s3342_s15, %s3763_s5 }
  0x57   : > { %p3345_p8 = pnand %p3344_p6, %p3343_p5  ;;  %p3350_p3 = por %p3349_p1, %p3348_p12 }
  0x59   : > { %p3346_p10 = pneg %p3345_p8  ;;  %p3352_p9 = por %p3351_p7, %p3350_p3 }
  0x5b   : > { %p3353_p11 = pnand %p3352_p9, %p3346_p10 }
  0x5d   : > { %3356 = shalt.err (!%p3353_p11)
}
  0x5e   : > { %s3357_s19 = scalar_lea.vmem %s3771_s18, 4096  ;;  %s3537_s1 = smov [#allocation3]  }
  0x5f   : > { %p3358_p0 = scmp.ne.s32.totalorder %s3771_s18, %s3357_s19  ;;  %s3362_s2 = sshll.u32 %s3537_s1, 4  ;;  %s3363_s2 = int_to_ptr.vmem [resolvable:$false] %s3362_s2 }
  0x60   : > { %s3364_s12 = scalar_lea.vmem %s3363_s2, 8192  ;;  %p3365_p5 = scmp.lt.s32.totalorder %s3771_s18, %s3363_s2 }
  0x61   : > { %p3360_p13 = pnand %p3358_p0, %p3344_p6  ;;  %p3366_p8 = scmp.lt.s32.totalorder %s3364_s12, %s3357_s19 }
  0x63   : > { %p3361_p2 = pneg %p3360_p13  ;;  %p3367_p12 = por %p3366_p8, %p3365_p5 }
  0x65   : > { %p3368_p1 = pnand %p3367_p12, %p3361_p2 }
  0x67   : > { %3371 = shalt.err (!%p3368_p1)
}
  0x68   : > { %s3538_s15 = smov 256   ;;  %s3539_s16 = smov 16  }
  0x69   : > { %2984 = dma.hbm_to_vmem [thread:$0]  (!%p3767_p4), %s3763_s5, 4096, %s3771_s18, %s437_s10, %s3538_s15, %s3538_s15, %s3539_s16  }
  0x6a   : > { %s457_s21 = sand.u32 1, %s3532_s13   ;;  %s2636_s1 = sshll.u32 %s3751_s3, 7 }
  0x6b   : > { %s2789_s2 = sshll.u32 %s3524_s29, 11  ;;  %s461_s19 = scalar_lea.vmem [#allocation6], %s2636_s1 }
  0x6c   : > { %s468_s12 = sshll.u32 %s461_s19, 4  ;;  %s4304_s9 = sld [smem:[#allocation30_spill]]  ;;  %s3809_s12 = int_to_ptr.vmem [resolvable:$true] %s468_s12 }
  0x6d   : > { %s3811_s11 = scalar_lea.sflag [#allocation7], %s457_s21 }
  0x72   : > { %s3807_s26 = scalar_lea.hbm %s4304_s9, %s2789_s2  ;;  %s3377_s8 = scalar_lea.hbm %s4304_s9, 4096 }
  0x73   : > { %s3372_s23 = scalar_lea.hbm %s3807_s26, 2048  ;;  %p3378_p9 = scmp.lt.u32.totalorder %s3807_s26, %s4304_s9 }
  0x74   : > { %p3373_p10 = scmp.ne.s32.totalorder %s3807_s26, %s3372_s23  ;;  %p3379_p11 = scmp.lt.u32.totalorder %s3377_s8, %s3372_s23 }
  0x75   : > { %p3381_p13 = scmp.lt.u32.totalorder %s3372_s23, %s3807_s26 }
  0x76   : > { %p3375_p3 = pnand %p3373_p10, %p3344_p6  ;;  %p3380_p0 = por %p3379_p11, %p3378_p9 }
  0x78   : > { %p3376_p7 = pneg %p3375_p3  ;;  %p3382_p2 = por %p3381_p13, %p3380_p0 }
  0x7a   : > { %p3383_p5 = pnand %p3382_p2, %p3376_p7 }
  0x7c   : > { %3386 = shalt.err (!%p3383_p5)
}
  0x7d   : > { %s3387_s10 = scalar_lea.vmem %s3809_s12, 2048  ;;  %s3540_s15 = smov [#allocation6]  }
  0x7e   : > { %p3388_p8 = scmp.ne.s32.totalorder %s3809_s12, %s3387_s10  ;;  %s3392_s16 = sshll.u32 %s3540_s15, 4  ;;  %s3393_s16 = int_to_ptr.vmem [resolvable:$false] %s3392_s16 }
  0x7f   : > { %s3394_s21 = scalar_lea.vmem %s3393_s16, 4096  ;;  %p3395_p10 = scmp.lt.s32.totalorder %s3809_s12, %s3393_s16 }
  0x80   : > { %p3390_p12 = pnand %p3388_p8, %p3344_p6  ;;  %p3396_p3 = scmp.lt.s32.totalorder %s3394_s21, %s3387_s10 }
  0x82   : > { %p3391_p1 = pneg %p3390_p12  ;;  %p3397_p9 = por %p3396_p3, %p3395_p10 }
  0x84   : > { %p3398_p11 = pnand %p3397_p9, %p3391_p1 }
  0x86   : > { %3401 = shalt.err (!%p3398_p11)
}
  0x87   : > { %s3541_s23 = smov 64   ;;  %s3542_s1 = smov 4  }
  0x88   : > { %2987 = dma.hbm_to_vmem [thread:$0]  (!%p3767_p4), %s3807_s26, 2048, %s3809_s12, %s3811_s11, %s3541_s23, %s3541_s23, %s3542_s1  }
  0x89   : > { %p4305_p6 = scmp.ne.s32.totalorder %s4293_s20, 0 }
  0x8a   : > { %s482_s2 = sand.u32 (!%p4305_p6), 1, %s3508_s25   ;;  %p4306_p7 = scmp.ne.s32.totalorder (!%p4305_p6), %s4288_s17, 0 }
  0x8b   : > { %480 = sbr.rel (%p4305_p6) target bundleno = 4131 (0x1023), region = 68  ;;  %s2640_s19 = sshll.u32 (!%p4305_p6), %s482_s2, 8 }
  0x8c   : > { %s483_s5 = scalar_lea.sflag (!%p4305_p6), [#allocation4], %s482_s2  ;;  %s3840_s18 = scalar_lea.vmem (!%p4305_p6), [#allocation3], %s2640_s19 }
  0x92   : > { %3475 = dma.done.wait (%p4306_p7), %s483_s5, 4096  }
  0x93   : > { %3477 = vsyncadd (%p4306_p7), %s483_s5, 4294963200  ;;  %s491_s8 = sand.u32 1, %s3672_s14   ;;  %s2641_s30 = sshll.u32 %s482_s2, 7 }
  0x94   : > { %s492_s11 = scalar_lea.sflag [#allocation7], %s491_s8  ;;  %s3847_s26 = scalar_lea.vmem [#allocation6], %s2641_s30 }
  0x95   : > { %3479 = dma.done.wait (%p4306_p7), %s492_s11, 2048  }
  0x96   : > { %3481 = vsyncadd (%p4306_p7), %s492_s11, 4294965248  ;;  %p4307_p4 = scmp.eq.s32.totalorder %s3672_s14, 0 }
  0x98   : > { %3483 = dma.done.wait (%p4307_p4), [#allocation7], 2048   ;;  %p4308_p0 = pmov %p4307_p4 }
  0x99   : > { %s4272_s20 = sand.u32 1, %s3496_s22   ;;  %s2644_s12 = sshll.u32 %s3520_s28, 1 }
  0x9a   : > { %3485 = vsyncadd (%p4308_p0), [#allocation7], 4294965248  ;;  %s2643_s24 = sshll.u32 %s4272_s20, 5  ;;  %p567_p13 = scmp.lt.s32.totalorder %s2644_s12, 3 }
  0x9b   : > { %p572_p2 = scmp.lt.s32.totalorder %s3516_s27, 1  ;;  %s4309_s29 = sld [smem:[#allocation28_spill]] }
  0x9c   : > { %s4341_s12 = smov (!%p567_p13, %s2644_s12), 3  ;;  %p2649_p5 = scmp.ne.s32.totalorder %s3516_s27, 0 }
  0x9d   : > { %s3863_s17 = scalar_select %p572_p2, %s3516_s27, 1 }
  0x9e   : > { %s2645_s14 = sshll.u32 %s4341_s12, 3  ;;  %593 = sbr.rel (%p2649_p5) target bundleno = 165 (0xa5), region = 84 }
  0x9f   : > { %s570_s15 = scalar_lea.vmem %s4242_s0, %s2645_s14  ;;  %s574_s23 = scalar_lea.vmem %s4246_s4, %s3863_s17 }
  0xa0   : > { %s2966_s1 = smul.u32 320, %s3863_s17  ;;  %s2790_s2 = sshll.u32 %s3863_s17, 6  ;;  %v594_v0 = vld [vmem:[%s570_s15] sm:$0xff] (!%p2649_p5)  ;;  %v595_v1 = vld [vmem:[%s570_s15 + $0x8] sm:$0xff] (!%p2649_p5) }
  0xa1   : > { %s3877_s8 = scalar_lea.vmem %s4248_s6, %s2790_s2  ;;  %s587_s20 = scalar_lea.vmem %s4249_s7, %s3863_s17  ;;  %596 = vst [vmem:[#allocation2] sm:$0xff] (!%p2649_p5), %v594_v0  ;;  %597 = vst [vmem:[#allocation2 + $0x8] sm:$0xff] (!%p2649_p5), %v595_v1 }
  0xa2   : > { %s3886_s3 = scalar_lea.vmem %s4309_s29, %s2966_s1  ;;  %s3888_s14 = scalar_lea.vmem [#allocation9], %s2643_s24 }
  0xa5 PF: > { %v3100_v5 = vld [vmem:[%s3886_s3 + $0x4] ss:$20 sps:$4 sm:$0xff]   ;;  %v3102_v6 = vld [vmem:[%s3886_s3] ss:$20 sps:$4 sm:$0xff]   ;;  %v3105_v9 = vld [vmem:[%s3886_s3 + $0x8] ss:$20 sps:$4 sm:$0xff]  }
  0xa6   : > { %v3103_v7 = vld [vmem:[%s3886_s3 + $0xc] ss:$20 sps:$4 sm:$0xff]   ;;  %887 = vmatprep.subr.bf16.mxu0 %v3100_v5  ;;  %v3108_v11 = vld [vmem:[%s3886_s3 + $0x28] ss:$20 sps:$4 sm:$0xff]   ;;  %v3111_v13 = vld [vmem:[%s3886_s3 + $0x30] ss:$20 sps:$4 sm:$0xff]  }
  0xa7   : > { %888 = vmatpush1.bf16.msra.mxu0 %v3102_v6  ;;  %930 = vmatprep.subr.bf16.mxu1 %v3103_v7  ;;  %v3106_v10 = vld [vmem:[%s3886_s3 + $0x2c] ss:$20 sps:$4 sm:$0xff]   ;;  %v3109_v12 = vld [vmem:[%s3886_s3 + $0x34] ss:$20 sps:$4 sm:$0xff]   ;;  %v3114_v15 = vld [vmem:[%s3886_s3 + $0x50] ss:$20 sps:$4 sm:$0xff]  }
  0xa8   : > { %v3891_v2 = vld [vmem:[#allocation2] sm:$0xff]  ;;  %v3893_v3 = vld [vmem:[#allocation2 + $0x8] sm:$0xff]  ;;  %931 = vmatpush1.bf16.msra.mxu1 %v3105_v9  ;;  %889 = vmatprep.subr.bf16.mxu0 %v3106_v10  ;;  %v3115_v16 = vld [vmem:[%s3886_s3 + $0x5c] ss:$20 sps:$4 sm:$0xff]   ;;  %v3543_v36 = vmov 0   ;;  %v3544_v39 = vmov 0.0  }
  0xa9   : > { %v607_v4 = vmul.f32 %v3891_v2, %v3891_v2  ;;  %v608_v8 = vmul.f32 %v3893_v3, %v3893_v3  ;;  %932 = vmatprep.subr.bf16.mxu1 %v3109_v12  ;;  %v3112_v14 = vld [vmem:[%s3886_s3 + $0x54] ss:$20 sps:$4 sm:$0xff]   ;;  %v3117_v17 = vld [vmem:[%s3886_s3 + $0x58] ss:$20 sps:$4 sm:$0xff]   ;;  %v3118_v18 = vld [vmem:[%s3886_s3 + $0x7c] ss:$20 sps:$4 sm:$0xff]   ;;  %919 = vmatprep.mubr.bf16.mxu0 %v3543_v36 }
  0xaa   : > { %v3120_v19 = vld [vmem:[%s3886_s3 + $0x78] ss:$20 sps:$4 sm:$0xff]   ;;  %v3123_v21 = vld [vmem:[%s3886_s3 + $0x80] ss:$20 sps:$4 sm:$0xff]   ;;  %v3129_v25 = vld [vmem:[%s3886_s3 + $0xa8] ss:$20 sps:$4 sm:$0xff]   ;;  %962 = vmatprep.mubr.bf16.mxu1 %v3543_v36 }
  0xab   : > { %609 = vadd.xlane.f32.xlu0 %v607_v4  ;;  %890 = vmatpush1.bf16.msra.mxu0 %v3108_v11  ;;  %v3121_v20 = vld [vmem:[%s3886_s3 + $0x84] ss:$20 sps:$4 sm:$0xff]   ;;  %v3126_v23 = vld [vmem:[%s3886_s3 + $0xa0] ss:$20 sps:$4 sm:$0xff]   ;;  %v3132_v27 = vld [vmem:[%s3886_s3 + $0xc8] ss:$20 sps:$4 sm:$0xff]  }
  0xac   : > { %933 = vmatpush1.bf16.msra.mxu1 %v3111_v13  ;;  %891 = vmatprep.subr.bf16.mxu0 %v3112_v14  ;;  %v3124_v22 = vld [vmem:[%s3886_s3 + $0xa4] ss:$20 sps:$4 sm:$0xff]   ;;  %v3127_v24 = vld [vmem:[%s3886_s3 + $0xac] ss:$20 sps:$4 sm:$0xff]   ;;  %v3133_v28 = vld [vmem:[%s3886_s3 + $0xd4] ss:$20 sps:$4 sm:$0xff]  }
  0xad   : > { %934 = vmatprep.subr.bf16.mxu1 %v3115_v16  ;;  %v3130_v26 = vld [vmem:[%s3886_s3 + $0xcc] ss:$20 sps:$4 sm:$0xff]   ;;  %v3135_v29 = vld [vmem:[%s3886_s3 + $0xd0] ss:$20 sps:$4 sm:$0xff]   ;;  %v3136_v30 = vld [vmem:[%s3886_s3 + $0xf4] ss:$20 sps:$4 sm:$0xff]  }
  0xae   : > { %v3138_v31 = vld [vmem:[%s3886_s3 + $0xf0] ss:$20 sps:$4 sm:$0xff]   ;;  %v3141_v33 = vld [vmem:[%s3886_s3 + $0xf8] ss:$20 sps:$4 sm:$0xff]   ;;  %v3147_v38 = vld [vmem:[%s3886_s3 + $0x120] ss:$20 sps:$4 sm:$0xff]  }
  0xaf   : > { %611 = vadd.xlane.f32.xlu0 %v608_v8  ;;  %892 = vmatpush1.bf16.msra.mxu0 %v3114_v15  ;;  %v3139_v32 = vld [vmem:[%s3886_s3 + $0xfc] ss:$20 sps:$4 sm:$0xff]   ;;  %v3145_v35 = vld [vmem:[%s3886_s3 + $0x124] ss:$20 sps:$4 sm:$0xff]   ;;  %v2650_v49 = vld [vmem:[%s574_s23] ss:$0 sm:$0xff] }
  0xb0   : > { %935 = vmatpush1.bf16.msra.mxu1 %v3117_v17  ;;  %893 = vmatprep.subr.bf16.mxu0 %v3118_v18  ;;  %v3142_v34 = vld [vmem:[%s3886_s3 + $0x11c] ss:$20 sps:$4 sm:$0xff]   ;;  %v3144_v37 = vld [vmem:[%s3886_s3 + $0x118] ss:$20 sps:$4 sm:$0xff]   ;;  %vm3545_vm0 = vmmov 0   ;;  %s4310_s15 = sld [smem:[#allocation25_spill]] }
  0xb1   : > { %936 = vmatprep.subr.bf16.mxu1 %v3121_v20  ;;  %v3148_v53 = vld [vmem:[%s3886_s3 + $0x10] ss:$20 sps:$4 sm:$0xff]   ;;  %v3149_v55 = vld [vmem:[%s3886_s3 + $0x38] ss:$20 sps:$4 sm:$0xff]   ;;  %v3150_v56 = vld [vmem:[%s3886_s3 + $0x60] ss:$20 sps:$4 sm:$0xff]  }
  0xb2   : > { %v3151_v57 = vld [vmem:[%s3886_s3 + $0x88] ss:$20 sps:$4 sm:$0xff]   ;;  %v3152_v58 = vld [vmem:[%s3886_s3 + $0xb0] ss:$20 sps:$4 sm:$0xff]   ;;  %v3153_v59 = vld [vmem:[%s3886_s3 + $0xd8] ss:$20 sps:$4 sm:$0xff]  }
  0xb3   : > { %894 = vmatpush1.bf16.msra.mxu0 %v3120_v19  ;;  %v3154_v60 = vld [vmem:[%s3886_s3 + $0x100] ss:$20 sps:$4 sm:$0xff]   ;;  %v3155_v61 = vld [vmem:[%s3886_s3 + $0x128] ss:$20 sps:$4 sm:$0xff]   ;;  %s4311_s23 = sld [smem:[#allocation26_spill]]  ;;  %vm1029_vm1 = vcmask 261120  }
  0xb4   : > { %937 = vmatpush1.bf16.msra.mxu1 %v3123_v21  ;;  %895 = vmatprep.subr.bf16.mxu0 %v3124_v22  ;;  %s4313_s3 = sld [smem:[#allocation27_spill]]  ;;  %vm1077_vm2 = vcmask 130048   ;;  %s3546_s24 = smov 96  }
  0xb5   : > { %938 = vmatprep.subr.bf16.mxu1 %v3127_v24  ;;  %s3547_s10 = smov 64   ;;  %s3548_s16 = smov 32  }
  0xb6   : > { %v600_v62 = vld [vmem:[%s4310_s15] sm:$0xff]  ;;  %p2764_p8 = scmp.ne.s32.totalorder %s3516_s27, 1 }
  0xb7   : > { %896 = vmatpush1.bf16.msra.mxu0 %v3126_v23 }
  0xb8   : > { %939 = vmatpush1.bf16.msra.mxu1 %v3129_v25  ;;  %897 = vmatprep.subr.bf16.mxu0 %v3130_v26 }
  0xb9   : > { %940 = vmatprep.subr.bf16.mxu1 %v3133_v28  ;;  %s4312_s1 = smov %s4311_s23  ;;  %v602_v63 = vld [vmem:[%s4311_s23] sm:$0xff] }
  0xba   : > { %v603_v6 = vld [vmem:[%s4312_s1 + $0x8] sm:$0xff] }
  0xbb   : > { %898 = vmatpush1.bf16.msra.mxu0 %v3132_v27 }
  0xbc   : > { %941 = vmatpush1.bf16.msra.mxu1 %v3135_v29  ;;  %899 = vmatprep.subr.bf16.mxu0 %v3136_v30  ;;  %v3994_v30 = vld [vmem:[%s4313_s3] sm:$0xff] }
  0xbd   : > { %942 = vmatprep.subr.bf16.mxu1 %v3139_v32  ;;  %v3999_v32 = vld [vmem:[%s4313_s3 + $0x8] sm:$0xff] }
  0xbf   : > { %900 = vmatpush1.bf16.msra.mxu0 %v3138_v31 }
  0xc0   : > { %943 = vmatpush1.bf16.msra.mxu1 %v3141_v33  ;;  %901 = vmatprep.subr.bf16.mxu0 %v3142_v34 }
  0xc1   : > { %944 = vmatprep.subr.bf16.mxu1 %v3145_v35 }
  0xc3   : > { %902 = vmatpush1.bf16.msra.mxu0 %v3144_v37 }
  0xc4   : > { %945 = vmatpush1.bf16.msra.mxu1 %v3147_v38  ;;  %2852 = vmatprep.subr.bf16.mxu0 %v3544_v39 }
  0xc5   : > { %2872 = vmatprep.subr.bf16.mxu1 %v3544_v39 }
 0x138   : > { %v610_v40 = vpop.xlane.xlu0 %609 }
 0x139   : > { %v614_v41 = vmul.f32 0.0078125, %v610_v40 }
 0x13b   : > { %v616_v42 = vadd.f32 1e-06, %v614_v41 }
 0x13c   : > { %v612_v43 = vpop.xlane.xlu0 %611 }
 0x13d   : > { %3228 = vrsqrt.f32 %v616_v42  ;;  %v615_v44 = vmul.f32 0.0078125, %v612_v43 }
 0x13f   : > { %v617_v45 = vadd.f32 1e-06, %v615_v44 }
 0x141   : > { %3230 = vrsqrt.f32 %v617_v45 }
 0x147   : > { %v3229_v46 = vpop.eup %3228 }
 0x148   : > { %v620_v47 = vmul.f32 %v3229_v46, %v3891_v2  ;;  %v601_v2 = vld [vmem:[%s4310_s15 + $0x8] sm:$0xff] }
 0x14a   : > { %v628_v51 = vmul.f32 %v2650_v49, %v620_v47 }
 0x14b   : > { %v3231_v48 = vpop.eup %3230 }
 0x14c   : > { %v621_v50 = vmul.f32 %v3231_v48, %v3893_v3 }
 0x14e   : > { %v629_v52 = vmul.f32 %v2650_v49, %v621_v50 }
 0x150   : > { %v630_v54 = vpack.c.bf16 %v629_v52, %v628_v51 }
 0x152   : > { %920 = vmatmul.mubr.bf16.vlgmr.msra.gmra.mrb[0].mxu0 %v630_v54  ;;  %963 = vmatmul.mubr.bf16.vlgmr.msra.gmra.mrb[0].mxu1 %v630_v54 }
 0x153   : > { %2853 = vmatpush3.bf16.msra.mxu0 %v3148_v53  ;;  %2868 = vmatprep.mubr.msk.bf16.mxu0 %vm3545_vm0, %v3544_v39 }
 0x154   : > { %2854 = vmatprep.subr.bf16.mxu0 %v3544_v39  ;;  %2874 = vmatprep.mubr.msk.bf16.mxu1 %vm3545_vm0, %v3544_v39 }
 0x157   : > { %2855 = vmatpush3.bf16.msra.mxu0 %v3149_v55 }
 0x158   : > { %2856 = vmatprep.subr.bf16.mxu0 %v3544_v39 }
 0x15b   : > { %2857 = vmatpush3.bf16.msra.mxu0 %v3150_v56 }
 0x15c   : > { %2858 = vmatprep.subr.bf16.mxu0 %v3544_v39 }
 0x15f   : > { %2859 = vmatpush3.bf16.msra.mxu0 %v3151_v57 }
 0x160   : > { %2860 = vmatprep.subr.bf16.mxu0 %v3544_v39 }
 0x163   : > { %2861 = vmatpush3.bf16.msra.mxu0 %v3152_v58  ;;  %v3156_v58 = vld [vmem:[%s3877_s8] sm:$0xff]  }
 0x164   : > { %2862 = vmatprep.subr.bf16.mxu0 %v3544_v39 }
 0x167   : > { %2863 = vmatpush3.bf16.msra.mxu0 %v3153_v59 }
 0x168   : > { %2864 = vmatprep.subr.bf16.mxu0 %v3544_v39 }
 0x16b   : > { %2865 = vmatpush3.bf16.msra.mxu0 %v3154_v60  ;;  %v3157_v60 = vld [vmem:[%s3877_s8 + $0x8] sm:$0xff]  }
 0x16c   : > { %2866 = vmatprep.subr.bf16.mxu0 %v3544_v39 }
 0x16f   : > { %2867 = vmatpush3.bf16.msra.mxu0 %v3155_v61 }
 0x170   : > { %2932 = vmatprep.subr.bf16.mxu0 %v3544_v39 }
 0x172   : > { %2869 = vmatmul.mubr.bf16.vlgmr.msra.gmra.mrb[4].mxu0 %v630_v54 }
 0x173   : > { %2934 = vmatprep.mubr.msk.bf16.mxu0 %vm3545_vm0, %v3544_v39 }
 0x225   : > { %v921_v0 = vpop.f32.mrb[0].mxu0  ;;  %v964_v1 = vpop.f32.mrb[0].mxu1 }
 0x226   : > { %v1015_v3 = vmul.f32 %v921_v0, %v600_v62  ;;  %v923_v4 = vpop.f32.mrb[1].mxu0  ;;  %v966_v5 = vpop.f32.mrb[1].mxu1 }
 0x227   : > { %v1017_v7 = vmul.f32 %v966_v5, %v602_v63  ;;  %v925_v8 = vpop.f32.mrb[2].mxu0  ;;  %v968_v9 = vpop.f32.mrb[2].mxu1  ;;  %v1022_v19 = vmul.f32 %v923_v4, %v600_v62 }
 0x228   : > { %v1016_v10 = vmul.f32 %v925_v8, %v601_v2  ;;  %v3976_v11 = vpack.c.bf16 %v968_v9, %v964_v1  ;;  %v927_v12 = vpop.f32.mrb[3].mxu0  ;;  %v970_v13 = vpop.f32.mrb[3].mxu1 }
 0x229   : > { %v1019_v14 = vadd.f32 %v1017_v7, %v1015_v3  ;;  %v1018_v15 = vmul.f32 %v970_v13, %v603_v6  ;;  %v1023_v23 = vmul.f32 %v927_v12, %v601_v2 }
 0x22b   : > { %v1020_v16 = vadd.f32 %v1018_v15, %v1016_v10 }
 0x22d   : > { %v3978_v17 = vpack.c.bf16 %v1020_v16, %v1019_v14 }
 0x245   : > { %v1007_v18 = vpop.f32.mrb[4].mxu0 }
 0x246   : > { %v1024_v20 = vmul.f32 %v1007_v18, %v602_v63  ;;  %v2870_v21 = vpop.f32.mrb[5].mxu0 }
 0x247   : > { %v1010_v22 = vpop.f32.mrb[6].mxu0 }
 0x248   : > { %v1026_v24 = vadd.f32 %v1024_v20, %v1022_v19  ;;  %v1025_v25 = vmul.f32 %v1010_v22, %v603_v6  ;;  %v2871_v26 = vpop.f32.mrb[7].mxu0 }
 0x24a   : > { %v1027_v27 = vadd.f32 %v1025_v25, %v1023_v23 }
 0x24c   : > { %v3980_v28 = vpack.c.bf16 %v1027_v27, %v1026_v24 }
 0x24e   : > { %v1034_v29 = vsel %vm1029_vm1, %v3980_v28, 0 }
 0x24f   : > { %2873 = vmatpush3.bf16.xpose.msra.mxu1 %v1034_v29 }
 0x250   : > { %2878 = vmatprep.subr.bf16.mxu1 %v3544_v39 }
 0x256   : > { %2875 = vmatmul.mubr.msk.bf16.vlgmr.msra.gmra.mrb[4].mxu1 %vm1029_vm1, %v3978_v17 }
 0x257   : > { %2879 = vmatpush3.bf16.msra.mxu1 %v3976_v11  ;;  %2880 = vmatprep.mubr.msk.bf16.mxu1 %vm3545_vm0, %v3544_v39 }
 0x258   : > { %2884 = vmatprep.subr.bf16.mxu1 %v3544_v39 }
 0x329   : > { %v1070_v31 = vpop.f32.mrb[4].mxu1 }
 0x32a   : > { %v1071_v33 = vadd.f32 %v1070_v31, %v3994_v30  ;;  %v2876_v34 = vpop.f32.mrb[5].mxu1 }
 0x32b   : > { %v1073_v35 = vpop.f32.mrb[6].mxu1 }
 0x32c   : > { %v1074_v37 = vadd.f32 %v1073_v35, %v3999_v32  ;;  %v2877_v38 = vpop.f32.mrb[7].mxu1  ;;  %v1078_v40 = vsel %vm1077_vm2, %v1071_v33, -inf }
 0x32d   : > { %1079 = vmax.xlane.f32.xlu1 %v1078_v40 }
 0x32e   : > { %v1081_v41 = vsel %vm1077_vm2, %v1074_v37, -inf }
 0x331   : > { %1082 = vmax.xlane.f32.xlu1 %v1081_v41  ;;  %v3159_v41 = vld [vmem:[%s3877_s8 + $0x18] sm:$0xff]  }
 0x3ba   : > { %v1080_v42 = vpop.xlane.xlu1 %1079 }
 0x3bb   : > { %v1084_v43 = vsub.f32 %v1071_v33, %v1080_v42 }
 0x3bd   : > { %v1086_v44 = vmul.f32 1.442695, %v1084_v43 }
 0x3be   : > { %v1083_v45 = vpop.xlane.xlu1 %1082 }
 0x3bf   : > { %3232 = vpow2.f32 %v1086_v44  ;;  %v1085_v46 = vsub.f32 %v1074_v37, %v1083_v45 }
 0x3c1   : > { %v1088_v47 = vmul.f32 1.442695, %v1085_v46 }
 0x3c3   : > { %3234 = vpow2.f32 %v1088_v47 }
 0x3c9   : > { %v3233_v48 = vpop.eup %3232 }
 0x3ca   : > { %v1090_v49 = vsel %vm1077_vm2, %v3233_v48, 0.0 }
 0x3cb   : > { %1091 = vadd.xlane.f32.xlu0 %v1090_v49 }
 0x3cd   : > { %v3235_v50 = vpop.eup %3234 }
 0x3ce   : > { %v1093_v51 = vsel %vm1077_vm2, %v3235_v50, 0.0 }
 0x3cf   : > { %1094 = vadd.xlane.f32.xlu1 %v1093_v51 }
 0x3e0   : > { %1209 = vrot.lane.b32.xlu1 %v3978_v17, %s3546_s24 }
 0x3e1   : > { %1212 = vrot.lane.b32.xlu0 %v3980_v28, %s3546_s24 }
 0x458   : > { %v1092_v52 = vpop.xlane.xlu0 %1091 }
 0x459   : > { %3236 = vrcp.f32 %v1092_v52 }
 0x45c   : > { %v1095_v53 = vpop.xlane.xlu1 %1094  ;;  %v1213_v63 = vpop.permute.xlu0 %1212 }
 0x45d   : > { %3238 = vrcp.f32 %v1095_v53  ;;  %v1218_v3 = vsel %vm1029_vm1, %v1213_v63, 0 }
 0x460   : > { %v1210_v4 = vpop.permute.xlu1 %1209 }
 0x463   : > { %v3237_v54 = vpop.eup %3236 }
 0x464   : > { %v1097_v56 = vmul.f32 %v3237_v54, %v3233_v48 }
 0x467   : > { %v3239_v55 = vpop.eup %3238 }
 0x468   : > { %v1099_v57 = vmul.f32 %v3239_v55, %v3235_v50 }
 0x46a   : > { %v1100_v59 = vpack.c.bf16 %v1099_v57, %v1097_v56 }
 0x46c   : > { %2881 = vmatmul.mubr.msk.bf16.vlgmr.msra.gmra.mrb[8].mxu1 %vm1077_vm2, %v1100_v59 }
 0x46d   : > { %2885 = vmatpush3.bf16.msra.mxu1 %v3156_v58  ;;  %2888 = vmatprep.mubr.msk.bf16.mxu1 %vm3545_vm0, %v3544_v39 }
 0x46e   : > { %2886 = vmatprep.subr.bf16.mxu1 %v3544_v39 }
 0x471   : > { %2887 = vmatpush3.bf16.msra.mxu1 %v3157_v60 }
 0x472   : > { %2892 = vmatprep.subr.bf16.mxu1 %v3544_v39 }
 0x53f   : > { %v1138_v61 = vpop.f32.mrb[8].mxu1 }
 0x540   : > { %v2882_v62 = vpop.f32.mrb[9].mxu1 }
 0x541   : > { %v1141_v0 = vpop.f32.mrb[10].mxu1 }
 0x542   : > { %v1145_v1 = vpack.c.bf16 %v1141_v0, %v1138_v61  ;;  %v2883_v2 = vpop.f32.mrb[11].mxu1 }
 0x544   : > { %2889 = vmatmul.mubr.msk.bf16.vlgmr.msra.gmra.mrb[12].mxu1 %vm1029_vm1, %v1145_v1 }
 0x545   : > { %2893 = vmatpush3.bf16.xpose.msra.mxu1 %v1218_v3  ;;  %2894 = vmatprep.mubr.msk.bf16.mxu1 %vm3545_vm0, %v3544_v39 }
 0x546   : > { %2898 = vmatprep.subr.bf16.mxu1 %v3544_v39 }
 0x54c   : > { %2895 = vmatmul.mubr.msk.bf16.vlgmr.msra.gmra.mrb[16].mxu1 %vm1029_vm1, %v1210_v4 }
 0x54d   : > { %2900 = vmatprep.mubr.msk.bf16.mxu1 %vm3545_vm0, %v3544_v39 }
 0x61f   : > { %v1254_v5 = vpop.f32.mrb[16].mxu1 }
 0x620   : > { %v1255_v6 = vadd.f32 %v1254_v5, %v3994_v30  ;;  %v2896_v7 = vpop.f32.mrb[17].mxu1 }
 0x621   : > { %v1257_v8 = vpop.f32.mrb[18].mxu1 }
 0x622   : > { %v1258_v9 = vadd.f32 %v1257_v8, %v3999_v32  ;;  %v2897_v10 = vpop.f32.mrb[19].mxu1  ;;  %v1261_v12 = vsel %vm1077_vm2, %v1255_v6, -inf }
 0x623   : > { %1262 = vmax.xlane.f32.xlu1 %v1261_v12 }
 0x624   : > { %v1264_v13 = vsel %vm1077_vm2, %v1258_v9, -inf }
 0x625   : > { %1265 = vmax.xlane.f32.xlu0 %v1264_v13 }
 0x6b0   : > { %v1263_v14 = vpop.xlane.xlu1 %1262 }
 0x6b1   : > { %v1267_v15 = vsub.f32 %v1255_v6, %v1263_v14 }
 0x6b2   : > { %v1266_v16 = vpop.xlane.xlu0 %1265 }
 0x6b3   : > { %v1269_v18 = vmul.f32 1.442695, %v1267_v15  ;;  %v1268_v19 = vsub.f32 %v1258_v9, %v1266_v16 }
 0x6b5   : > { %3240 = vpow2.f32 %v1269_v18  ;;  %v1271_v20 = vmul.f32 1.442695, %v1268_v19 }
 0x6b7   : > { %3242 = vpow2.f32 %v1271_v20 }
 0x6bf   : > { %v3241_v21 = vpop.eup %3240 }
 0x6c0   : > { %v1273_v22 = vsel %vm1077_vm2, %v3241_v21, 0.0 }
 0x6c1   : > { %v3243_v23 = vpop.eup %3242  ;;  %1274 = vadd.xlane.f32.xlu0 %v1273_v22 }
 0x6c2   : > { %v1276_v24 = vsel %vm1077_vm2, %v3243_v23, 0.0 }
 0x6c3   : > { %1277 = vadd.xlane.f32.xlu1 %v1276_v24 }
 0x6d4   : > { %1397 = vrot.lane.b32.xlu1 %v3980_v28, %s3547_s10 }
 0x6d7   : > { %1285 = vrot.lane.b32.xlu0 %v3976_v11, %s3546_s24 }
 0x6d8   : > { %1395 = vrot.lane.b32.xlu1 %v3978_v17, %s3547_s10 }
 0x6db   : > { %1579 = vrot.lane.b32.xlu0 %v3978_v17, %s3548_s16 }
 0x6dc   : > { %1581 = vrot.lane.b32.xlu1 %v3980_v28, %s3548_s16  ;;  %v3158_v28 = vld [vmem:[%s3877_s8 + $0x10] sm:$0xff]  }
 0x74e   : > { %v1275_v25 = vpop.xlane.xlu0 %1274 }
 0x74f   : > { %3244 = vrcp.f32 %v1275_v25 }
 0x750   : > { %v1278_v26 = vpop.xlane.xlu1 %1277 }
 0x751   : > { %3246 = vrcp.f32 %v1278_v26 }
 0x752   : > { %v1286_v27 = vpop.permute.xlu0 %1285 }
 0x753   : > { %2899 = vmatpush3.bf16.msra.mxu1 %v1286_v27 }
 0x754   : > { %v1398_v29 = vpop.permute.xlu1 %1397  ;;  %2904 = vmatprep.subr.bf16.mxu1 %v3544_v39 }
 0x755   : > { %v1403_v48 = vsel %vm1029_vm1, %v1398_v29, 0 }
 0x756   : > { %v1580_v42 = vpop.permute.xlu0 %1579 }
 0x758   : > { %v1396_v31 = vpop.permute.xlu1 %1395 }
 0x759   : > { %v3245_v33 = vpop.eup %3244 }
 0x75a   : > { %v1280_v35 = vmul.f32 %v3245_v33, %v3241_v21 }
 0x75b   : > { %v3247_v34 = vpop.eup %3246 }
 0x75c   : > { %v1282_v37 = vmul.f32 %v3247_v34, %v3243_v23  ;;  %v1582_v17 = vpop.permute.xlu1 %1581 }
 0x75d   : > { %v1587_v38 = vsel %vm1029_vm1, %v1582_v17, 0 }
 0x75e   : > { %2933 = vmatpush3.bf16.xpose.msra.mxu0 %v1587_v38  ;;  %v1283_v40 = vpack.c.bf16 %v1282_v37, %v1280_v35 }
 0x75f   : > { %2938 = vmatprep.subr.bf16.mxu0 %v3544_v39 }
 0x760   : > { %2901 = vmatmul.mubr.msk.bf16.vlgmr.msra.gmra.mrb[20].mxu1 %vm1077_vm2, %v1283_v40  ;;  %v3161_v40 = vld [vmem:[%s3877_s8 + $0x28] sm:$0xff]  }
 0x761   : > { %2905 = vmatpush3.bf16.msra.mxu1 %v3158_v28  ;;  %2908 = vmatprep.mubr.msk.bf16.mxu1 %vm3545_vm0, %v3544_v39 }
 0x762   : > { %2906 = vmatprep.subr.bf16.mxu1 %v3544_v39 }
 0x765   : > { %2935 = vmatmul.mubr.msk.bf16.vlgmr.msra.gmra.mrb[8].mxu0 %vm1029_vm1, %v1580_v42  ;;  %2907 = vmatpush3.bf16.msra.mxu1 %v3159_v41 }
 0x766   : > { %2912 = vmatprep.subr.bf16.mxu1 %v3544_v39  ;;  %2940 = vmatprep.mubr.msk.bf16.mxu0 %vm3545_vm0, %v3544_v39 }
 0x833   : > { %v1325_v43 = vpop.f32.mrb[20].mxu1 }
 0x834   : > { %v2902_v44 = vpop.f32.mrb[21].mxu1 }
 0x835   : > { %v1328_v45 = vpop.f32.mrb[22].mxu1  ;;  %v3162_v44 = vld [vmem:[%s3877_s8 + $0x30] sm:$0xff]  }
 0x836   : > { %v1332_v46 = vpack.c.bf16 %v1328_v45, %v1325_v43  ;;  %v2903_v47 = vpop.f32.mrb[23].mxu1 }
 0x837   : > { %v3163_v47 = vld [vmem:[%s3877_s8 + $0x38] sm:$0xff]  }
 0x838   : > { %2909 = vmatmul.mubr.msk.bf16.vlgmr.msra.gmra.mrb[12].mxu1 %vm1029_vm1, %v1332_v46  ;;  %v1623_v49 = vpop.f32.mrb[8].mxu0 }
 0x839   : > { %2913 = vmatpush3.bf16.xpose.msra.mxu1 %v1403_v48  ;;  %v2936_v50 = vpop.f32.mrb[9].mxu0  ;;  %2914 = vmatprep.mubr.msk.bf16.mxu1 %vm3545_vm0, %v3544_v39  ;;  %v1624_v60 = vadd.f32 %v1623_v49, %v3994_v30 }
 0x83a   : > { %v1626_v51 = vpop.f32.mrb[10].mxu0  ;;  %2918 = vmatprep.subr.bf16.mxu1 %v3544_v39 }
 0x83b   : > { %v2937_v52 = vpop.f32.mrb[11].mxu0  ;;  %v1627_v62 = vadd.f32 %v1626_v51, %v3999_v32  ;;  %v1630_v63 = vsel %vm1077_vm2, %v1624_v60, -inf }
 0x83d   : > { %v1633_v0 = vsel %vm1077_vm2, %v1627_v62, -inf }
 0x840   : > { %2915 = vmatmul.mubr.msk.bf16.vlgmr.msra.gmra.mrb[24].mxu1 %vm1029_vm1, %v1396_v31 }
 0x841   : > { %2920 = vmatprep.mubr.msk.bf16.mxu1 %vm3545_vm0, %v3544_v39 }
 0x913   : > { %v1439_v53 = vpop.f32.mrb[24].mxu1 }
 0x914   : > { %v1440_v54 = vadd.f32 %v1439_v53, %v3994_v30  ;;  %v2916_v55 = vpop.f32.mrb[25].mxu1  ;;  %v3164_v53 = vld [vmem:[%s3840_s18] ss:$16 sps:$4 sm:$0xff]  }
 0x915   : > { %v1442_v56 = vpop.f32.mrb[26].mxu1  ;;  %v3167_v55 = vld [vmem:[%s3840_s18 + $0x8] ss:$16 sps:$4 sm:$0xff]  }
 0x916   : > { %v1443_v57 = vadd.f32 %v1442_v56, %v3999_v32  ;;  %v2917_v58 = vpop.f32.mrb[27].mxu1  ;;  %v1446_v59 = vsel %vm1077_vm2, %v1440_v54, -inf  ;;  %v3169_v56 = vld [vmem:[%s3840_s18 + $0xc] ss:$16 sps:$4 sm:$0xff]  }
 0x917   : > { %1447 = vmax.xlane.f32.xlu1 %v1446_v59  ;;  %v3170_v58 = vld [vmem:[%s3840_s18 + $0x20] ss:$16 sps:$4 sm:$0xff]   ;;  %v3173_v59 = vld [vmem:[%s3840_s18 + $0x28] ss:$16 sps:$4 sm:$0xff]  }
 0x918   : > { %v1449_v61 = vsel %vm1077_vm2, %v1443_v57, -inf }
 0x919   : > { %1450 = vmax.xlane.f32.xlu0 %v1449_v61  ;;  %v3181_v61 = vld [vmem:[%s3840_s18 + $0x4c] ss:$16 sps:$4 sm:$0xff]  }
 0x91d   : > { %1631 = vmax.xlane.f32.xlu0 %v1630_v63 }
 0x921   : > { %1634 = vmax.xlane.f32.xlu0 %v1633_v0  ;;  %v3284_v0 = vld [vmem:[#allocation2] sm:$0xff] }
 0x9a4   : > { %v1448_v1 = vpop.xlane.xlu1 %1447 }
 0x9a5   : > { %v1452_v2 = vsub.f32 %v1440_v54, %v1448_v1  ;;  %v3166_v54 = vld [vmem:[%s3840_s18 + $0x4] ss:$16 sps:$4 sm:$0xff]  }
 0x9a6   : > { %v1451_v3 = vpop.xlane.xlu0 %1450 }
 0x9a7   : > { %v1454_v4 = vmul.f32 1.442695, %v1452_v2  ;;  %v1453_v5 = vsub.f32 %v1443_v57, %v1451_v3  ;;  %v3175_v57 = vld [vmem:[%s3840_s18 + $0x2c] ss:$16 sps:$4 sm:$0xff]  }
 0x9a9   : > { %3248 = vpow2.f32 %v1454_v4  ;;  %v1456_v6 = vmul.f32 1.442695, %v1453_v5  ;;  %v3285_v4 = vld [vmem:[#allocation2 + $0x8] sm:$0xff] }
 0x9aa   : > { %v1632_v7 = vpop.xlane.xlu0 %1631 }
 0x9ab   : > { %3250 = vpow2.f32 %v1456_v6  ;;  %v1636_v30 = vsub.f32 %v1624_v60, %v1632_v7  ;;  %v3178_v60 = vld [vmem:[%s3840_s18 + $0x44] ss:$16 sps:$4 sm:$0xff]  }
 0x9ad   : > { %v1638_v8 = vmul.f32 1.442695, %v1636_v30 }
 0x9ae   : > { %v1635_v9 = vpop.xlane.xlu0 %1634 }
 0x9af   : > { %3252 = vpow2.f32 %v1638_v8  ;;  %v1637_v32 = vsub.f32 %v1627_v62, %v1635_v9  ;;  %v3179_v62 = vld [vmem:[%s3840_s18 + $0x48] ss:$16 sps:$4 sm:$0xff]   ;;  %v3184_v8 = vld [vmem:[%s3840_s18 + $0x64] ss:$16 sps:$4 sm:$0xff]   ;;  %v3187_v9 = vld [vmem:[%s3840_s18 + $0x6c] ss:$16 sps:$4 sm:$0xff]  }
 0x9b1   : > { %v1640_v10 = vmul.f32 1.442695, %v1637_v32  ;;  %v3182_v32 = vld [vmem:[%s3840_s18 + $0x60] ss:$16 sps:$4 sm:$0xff]  }
 0x9b3   : > { %v3249_v12 = vpop.eup %3248  ;;  %3254 = vpow2.f32 %v1640_v10  ;;  %v3185_v10 = vld [vmem:[%s3840_s18 + $0x68] ss:$16 sps:$4 sm:$0xff]  }
 0x9b4   : > { %v1458_v13 = vsel %vm1077_vm2, %v3249_v12, 0.0 }
 0x9b5   : > { %v3251_v14 = vpop.eup %3250  ;;  %1459 = vadd.xlane.f32.xlu1 %v1458_v13  ;;  %v3190_v13 = vld [vmem:[%s3840_s18 + $0x84] ss:$16 sps:$4 sm:$0xff]  }
 0x9b6   : > { %v1461_v15 = vsel %vm1077_vm2, %v3251_v14, 0.0 }
 0x9b7   : > { %1462 = vadd.xlane.f32.xlu0 %v1461_v15  ;;  %v3193_v15 = vld [vmem:[%s3840_s18 + $0x8c] ss:$16 sps:$4 sm:$0xff]  }
 0x9b9   : > { %v3253_v16 = vpop.eup %3252 }
 0x9ba   : > { %v1642_v18 = vsel %vm1077_vm2, %v3253_v16, 0.0 }
 0x9bb   : > { %1643 = vadd.xlane.f32.xlu1 %v1642_v18  ;;  %v3199_v18 = vld [vmem:[%s3840_s18 + $0xac] ss:$16 sps:$4 sm:$0xff]  }
 0x9bd   : > { %v3255_v19 = vpop.eup %3254 }
 0x9be   : > { %v1645_v20 = vsel %vm1077_vm2, %v3255_v19, 0.0 }
 0x9bf   : > { %1646 = vadd.xlane.f32.xlu0 %v1645_v20  ;;  %v3197_v20 = vld [vmem:[%s3840_s18 + $0xa8] ss:$16 sps:$4 sm:$0xff]  }
 0x9cc   : > { %1469 = vrot.lane.b32.xlu1 %v3976_v11, %s3547_s10 }
 0x9d5   : > { %1653 = vrot.lane.b32.xlu0 %v3976_v11, %s3548_s16  ;;  %v3160_v11 = vld [vmem:[%s3877_s8 + $0x20] sm:$0xff]  }
 0xa42   : > { %v1460_v21 = vpop.xlane.xlu1 %1459 }
 0xa43   : > { %3256 = vrcp.f32 %v1460_v21  ;;  %v3202_v21 = vld [vmem:[%s3840_s18 + $0xc4] ss:$16 sps:$4 sm:$0xff]  }
 0xa44   : > { %v1463_v22 = vpop.xlane.xlu0 %1462 }
 0xa45   : > { %3258 = vrcp.f32 %v1463_v22  ;;  %v3205_v22 = vld [vmem:[%s3840_s18 + $0xcc] ss:$16 sps:$4 sm:$0xff]  }
 0xa48   : > { %v1644_v23 = vpop.xlane.xlu1 %1643 }
 0xa49   : > { %3260 = vrcp.f32 %v1644_v23  ;;  %v3200_v23 = vld [vmem:[%s3840_s18 + $0xc0] ss:$16 sps:$4 sm:$0xff]  }
 0xa4c   : > { %v1470_v24 = vpop.permute.xlu1 %1469  ;;  %v1647_v25 = vpop.xlane.xlu0 %1646 }
 0xa4d   : > { %v3257_v26 = vpop.eup %3256  ;;  %3262 = vrcp.f32 %v1647_v25  ;;  %2919 = vmatpush3.bf16.msra.mxu1 %v1470_v24  ;;  %v3203_v24 = vld [vmem:[%s3840_s18 + $0xc8] ss:$16 sps:$4 sm:$0xff]   ;;  %v3208_v25 = vld [vmem:[%s3840_s18 + $0xe4] ss:$16 sps:$4 sm:$0xff]  }
 0xa4e   : > { %2924 = vmatprep.subr.bf16.mxu1 %v3544_v39  ;;  %v1465_v29 = vmul.f32 %v3257_v26, %v3249_v12  ;;  %v3188_v12 = vld [vmem:[%s3840_s18 + $0x80] ss:$16 sps:$4 sm:$0xff]   ;;  %v3211_v26 = vld [vmem:[%s3840_s18 + $0xec] ss:$16 sps:$4 sm:$0xff]  }
 0xa4f   : > { %v3259_v27 = vpop.eup %3258 }
 0xa50   : > { %v1467_v31 = vmul.f32 %v3259_v27, %v3251_v14  ;;  %v1654_v33 = vpop.permute.xlu0 %1653  ;;  %v3191_v14 = vld [vmem:[%s3840_s18 + $0x88] ss:$16 sps:$4 sm:$0xff]   ;;  %v3206_v27 = vld [vmem:[%s3840_s18 + $0xe0] ss:$16 sps:$4 sm:$0xff]  }
 0xa51   : > { %2939 = vmatpush3.bf16.msra.mxu0 %v1654_v33 }
 0xa52   : > { %v1468_v34 = vpack.c.bf16 %v1467_v31, %v1465_v29  ;;  %1979 = vmatprep.subr.bf16.mxu0 %v3166_v54  ;;  %v3209_v29 = vld [vmem:[%s3840_s18 + $0xe8] ss:$16 sps:$4 sm:$0xff]   ;;  %v3221_v54 = vld [vmem:[%s3847_s26 + $0x20] sm:$0xff]  }
 0xa53   : > { %v3261_v35 = vpop.eup %3260 }
 0xa54   : > { %2921 = vmatmul.mubr.msk.bf16.vlgmr.msra.gmra.mrb[28].mxu1 %vm1077_vm2, %v1468_v34  ;;  %v1649_v17 = vmul.f32 %v3261_v35, %v3253_v16  ;;  %v3196_v16 = vld [vmem:[%s3840_s18 + $0xa4] ss:$16 sps:$4 sm:$0xff]  }
 0xa55   : > { %2925 = vmatpush3.bf16.msra.mxu1 %v3160_v11  ;;  %2928 = vmatprep.mubr.msk.bf16.mxu1 %vm3545_vm0, %v3544_v39 }
 0xa56   : > { %2926 = vmatprep.subr.bf16.mxu1 %v3544_v39 }
 0xa57   : > { %v3263_v37 = vpop.eup %3262 }
 0xa58   : > { %v1651_v38 = vmul.f32 %v3263_v37, %v3255_v19  ;;  %v3194_v19 = vld [vmem:[%s3840_s18 + $0xa0] ss:$16 sps:$4 sm:$0xff]  }
 0xa59   : > { %2927 = vmatpush3.bf16.msra.mxu1 %v3161_v40  ;;  %v2711_v40 = vld [vmem:[%s587_s20] ss:$0 sm:$0xff]  ;;  %s4314_s20 = sld [smem:[#allocation31_spill]] (!%p2764_p8) }
 0xa5a   : > { %v1652_v28 = vpack.c.bf16 %v1651_v38, %v1649_v17  ;;  %2944 = vmatprep.subr.bf16.mxu1 %v3544_v39 }
 0xa5c   : > { %2941 = vmatmul.mubr.msk.bf16.vlgmr.msra.gmra.mrb[12].mxu0 %vm1077_vm2, %v1652_v28 }
 0xa5d   : > { %2011 = vmatprep.mubr.bf16.mxu0 %v3543_v36  ;;  %1980 = vmatpush1.bf16.msra.mxu0 %v3164_v53  ;;  %v3220_v53 = vld [vmem:[%s3847_s26 + $0x60] sm:$0xff]  }
 0xb27   : > { %v1509_v41 = vpop.f32.mrb[28].mxu1 }
 0xb28   : > { %v2922_v42 = vpop.f32.mrb[29].mxu1 }
 0xb29   : > { %v1512_v43 = vpop.f32.mrb[30].mxu1 }
 0xb2a   : > { %v1516_v45 = vpack.c.bf16 %v1512_v43, %v1509_v41  ;;  %v2923_v46 = vpop.f32.mrb[31].mxu1 }
 0xb2b   : > { %v3213_v46 = vld [vmem:[%s3847_s26] sm:$0xff]  }
 0xb2c   : > { %2929 = vmatmul.mubr.msk.bf16.vlgmr.msra.gmra.mrb[12].mxu1 %vm1029_vm1, %v1516_v45  ;;  %v3212_v45 = vld [vmem:[%s3847_s26 + $0x40] sm:$0xff]  }
 0xb2d   : > { %2945 = vmatpush3.bf16.msra.mxu1 %v3162_v44  ;;  %2948 = vmatprep.mubr.msk.bf16.mxu1 %vm3545_vm0, %v3544_v39 }
 0xb2e   : > { %2946 = vmatprep.subr.bf16.mxu1 %v3544_v39  ;;  %v3172_v39 = vld [vmem:[%s3840_s18 + $0x24] ss:$16 sps:$4 sm:$0xff]  }
 0xb2f   : > { %v1693_v48 = vpop.f32.mrb[12].mxu0  ;;  %1981 = vmatprep.subr.bf16.mxu0 %v3172_v39  ;;  %v3224_v39 = vld [vmem:[%s3847_s26 + $0x70] sm:$0xff]  }
 0xb30   : > { %v2942_v49 = vpop.f32.mrb[13].mxu0  ;;  %1982 = vmatpush1.bf16.msra.mxu0 %v3170_v58  ;;  %v3226_v58 = vld [vmem:[%s3847_s26 + $0x78] sm:$0xff]  }
 0xb31   : > { %v1696_v50 = vpop.f32.mrb[14].mxu0  ;;  %2947 = vmatpush3.bf16.msra.mxu1 %v3163_v47  ;;  %1983 = vmatprep.subr.bf16.mxu0 %v3178_v60  ;;  %v3214_v47 = vld [vmem:[%s3847_s26 + $0x48] sm:$0xff]   ;;  %v3216_v49 = vld [vmem:[%s3847_s26 + $0x50] sm:$0xff]  }
 0xb32   : > { %v1700_v51 = vpack.c.bf16 %v1696_v50, %v1693_v48  ;;  %v2943_v52 = vpop.f32.mrb[15].mxu0  ;;  %2022 = vmatprep.subr.bf16.mxu1 %v3169_v56  ;;  %v3215_v48 = vld [vmem:[%s3847_s26 + $0x8] sm:$0xff]   ;;  %v3217_v50 = vld [vmem:[%s3847_s26 + $0x10] sm:$0xff]  }
 0xb33   : > { %v3219_v52 = vld [vmem:[%s3847_s26 + $0x18] sm:$0xff]   ;;  %v3223_v56 = vld [vmem:[%s3847_s26 + $0x28] sm:$0xff]  }
 0xb38   : > { %2949 = vmatmul.mubr.msk.bf16.vlgmr.msra.gmra.mrb[12].mxu1 %vm1029_vm1, %v1700_v51  ;;  %v3218_v51 = vld [vmem:[%s3847_s26 + $0x58] sm:$0xff]  }
 0xb39   : > { %2054 = vmatprep.mubr.bf16.mxu1 %v3543_v36  ;;  %2023 = vmatpush1.bf16.msra.mxu1 %v3167_v55  ;;  %v3176_v36 = vld [vmem:[%s3840_s18 + $0x40] ss:$16 sps:$4 sm:$0xff]   ;;  %v3222_v55 = vld [vmem:[%s3847_s26 + $0x68] sm:$0xff]  }
 0xb3a   : > { %2024 = vmatprep.subr.bf16.mxu1 %v3175_v57  ;;  %1984 = vmatpush1.bf16.msra.mxu0 %v3176_v36  ;;  %v3225_v57 = vld [vmem:[%s3847_s26 + $0x30] sm:$0xff]  }
 0xb3b   : > { %1985 = vmatprep.subr.bf16.mxu0 %v3184_v8 }
 0xb3d   : > { %2025 = vmatpush1.bf16.msra.mxu1 %v3173_v59  ;;  %v3227_v59 = vld [vmem:[%s3847_s26 + $0x38] sm:$0xff]  }
 0xb3e   : > { %2026 = vmatprep.subr.bf16.mxu1 %v3181_v61  ;;  %1986 = vmatpush1.bf16.msra.mxu0 %v3182_v32 }
 0xb3f   : > { %1987 = vmatprep.subr.bf16.mxu0 %v3190_v13 }
 0xb41   : > { %2027 = vmatpush1.bf16.msra.mxu1 %v3179_v62 }
 0xb42   : > { %2028 = vmatprep.subr.bf16.mxu1 %v3187_v9  ;;  %1988 = vmatpush1.bf16.msra.mxu0 %v3188_v12 }
 0xb43   : > { %1989 = vmatprep.subr.bf16.mxu0 %v3196_v16 }
 0xb45   : > { %2029 = vmatpush1.bf16.msra.mxu1 %v3185_v10 }
 0xb46   : > { %2030 = vmatprep.subr.bf16.mxu1 %v3193_v15  ;;  %1990 = vmatpush1.bf16.msra.mxu0 %v3194_v19 }
 0xb47   : > { %1991 = vmatprep.subr.bf16.mxu0 %v3202_v21 }
 0xb49   : > { %2031 = vmatpush1.bf16.msra.mxu1 %v3191_v14 }
 0xb4a   : > { %2032 = vmatprep.subr.bf16.mxu1 %v3199_v18  ;;  %1992 = vmatpush1.bf16.msra.mxu0 %v3200_v23 }
 0xb4b   : > { %1993 = vmatprep.subr.bf16.mxu0 %v3208_v25 }
 0xb4d   : > { %2033 = vmatpush1.bf16.msra.mxu1 %v3197_v20 }
 0xb4e   : > { %2034 = vmatprep.subr.bf16.mxu1 %v3205_v22  ;;  %1994 = vmatpush1.bf16.msra.mxu0 %v3206_v27 }
 0xb4f   : > { %2830 = vmatprep.subr.bf16.mxu0 %v3212_v45  ;;  %v3289_v45 = vld [vmem:[#allocation8 + $0x14] ss:$8 sps:$4 sm:$0xff] (!%p2764_p8)  }
 0xb51   : > { %2035 = vmatpush1.bf16.msra.mxu1 %v3203_v24 }
 0xb52   : > { %2036 = vmatprep.subr.bf16.mxu1 %v3211_v26 }
 0xb55   : > { %2037 = vmatpush1.bf16.msra.mxu1 %v3209_v29 }
 0xc0b   : > { %v1754_v63 = vpop.f32.mrb[12].mxu1 }
 0xc0c   : > { %v4109_v1 = vadd.f32 %v3284_v0, %v1754_v63  ;;  %v2950_v2 = vpop.f32.mrb[13].mxu1 }
 0xc0d   : > { %v1757_v3 = vpop.f32.mrb[14].mxu1 }
 0xc0e   : > { %v4111_v5 = vadd.f32 %v3285_v4, %v1757_v3  ;;  %v2951_v6 = vpop.f32.mrb[15].mxu1  ;;  %v1764_v7 = vmul.f32 %v4109_v1, %v4109_v1 }
 0xc10   : > { %1766 = vadd.xlane.f32.xlu1 %v1764_v7  ;;  %v1765_v30 = vmul.f32 %v4111_v5, %v4111_v5 }
 0xc12   : > { %1768 = vadd.xlane.f32.xlu0 %v1765_v30 }
 0xc9d   : > { %v1767_v31 = vpop.xlane.xlu1 %1766 }
 0xc9e   : > { %v1770_v33 = vmul.f32 0.0078125, %v1767_v31 }
 0xc9f   : > { %v1769_v11 = vpop.xlane.xlu0 %1768 }
 0xca0   : > { %v1772_v34 = vadd.f32 1e-06, %v1770_v33  ;;  %v1771_v35 = vmul.f32 0.0078125, %v1769_v11 }
 0xca2   : > { %3264 = vrsqrt.f32 %v1772_v34  ;;  %v1773_v37 = vadd.f32 1e-06, %v1771_v35 }
 0xca4   : > { %3266 = vrsqrt.f32 %v1773_v37 }
 0xcac   : > { %v3265_v17 = vpop.eup %3264 }
 0xcad   : > { %v1776_v38 = vmul.f32 %v3265_v17, %v4109_v1 }
 0xcae   : > { %v3267_v28 = vpop.eup %3266 }
 0xcaf   : > { %v1777_v41 = vmul.f32 %v3267_v28, %v4111_v5  ;;  %v1784_v42 = vmul.f32 %v2711_v40, %v1776_v38 }
 0xcb1   : > { %v1785_v43 = vmul.f32 %v2711_v40, %v1777_v41 }
 0xcb3   : > { %v1786_v44 = vpack.c.bf16 %v1785_v43, %v1784_v42  ;;  %v3286_v42 = vld [vmem:[#allocation8 + $0x4] ss:$8 sps:$4 sm:$0xff] (!%p2764_p8)   ;;  %v3288_v43 = vld [vmem:[#allocation8] ss:$8 sps:$4 sm:$0xff] (!%p2764_p8)  }
 0xcb5   : > { %2012 = vmatmul.mubr.bf16.vlgmr.msra.gmra.mrb[16].mxu0 %v1786_v44  ;;  %2055 = vmatmul.mubr.bf16.vlgmr.msra.gmra.mrb[32].mxu1 %v1786_v44 }
 0xcb6   : > { %2831 = vmatpush3.bf16.msra.mxu0 %v3213_v46  ;;  %v3291_v46 = vld [vmem:[#allocation8 + $0x10] ss:$8 sps:$4 sm:$0xff] (!%p2764_p8)  }
 0xcb7   : > { %2832 = vmatprep.subr.bf16.mxu0 %v3214_v47  ;;  %v3294_v47 = vld [vmem:[#allocation8 + $0x20] ss:$8 sps:$4 sm:$0xff] (!%p2764_p8)  }
 0xcba   : > { %2833 = vmatpush3.bf16.msra.mxu0 %v3215_v48  ;;  %v3297_v48 = vld [vmem:[#allocation8 + $0x30] ss:$8 sps:$4 sm:$0xff] (!%p2764_p8)  }
 0xcbb   : > { %2834 = vmatprep.subr.bf16.mxu0 %v3216_v49  ;;  %v3298_v49 = vld [vmem:[#allocation8 + $0x44] ss:$8 sps:$4 sm:$0xff] (!%p2764_p8)  }
 0xcbe   : > { %2835 = vmatpush3.bf16.msra.mxu0 %v3217_v50  ;;  %v3300_v50 = vld [vmem:[#allocation8 + $0x40] ss:$8 sps:$4 sm:$0xff] (!%p2764_p8)  }
 0xcbf   : > { %2836 = vmatprep.subr.bf16.mxu0 %v3218_v51  ;;  %v3301_v51 = vld [vmem:[#allocation8 + $0x54] ss:$8 sps:$4 sm:$0xff] (!%p2764_p8)  }
 0xcc2   : > { %2837 = vmatpush3.bf16.msra.mxu0 %v3219_v52  ;;  %v3303_v52 = vld [vmem:[#allocation8 + $0x50] ss:$8 sps:$4 sm:$0xff] (!%p2764_p8)  }
 0xcc3   : > { %2838 = vmatprep.subr.bf16.mxu0 %v3220_v53  ;;  %v3304_v53 = vld [vmem:[#allocation8 + $0x64] ss:$8 sps:$4 sm:$0xff] (!%p2764_p8)  }
 0xcc6   : > { %2839 = vmatpush3.bf16.msra.mxu0 %v3221_v54  ;;  %v3306_v54 = vld [vmem:[#allocation8 + $0x60] ss:$8 sps:$4 sm:$0xff] (!%p2764_p8)  }
 0xcc7   : > { %2840 = vmatprep.subr.bf16.mxu0 %v3222_v55  ;;  %v3307_v55 = vld [vmem:[#allocation8 + $0x74] ss:$8 sps:$4 sm:$0xff] (!%p2764_p8)  }
 0xcca   : > { %2841 = vmatpush3.bf16.msra.mxu0 %v3223_v56  ;;  %v3309_v56 = vld [vmem:[#allocation8 + $0x70] ss:$8 sps:$4 sm:$0xff] (!%p2764_p8)  }
 0xccb   : > { %2842 = vmatprep.subr.bf16.mxu0 %v3224_v39  ;;  %v3549_v39 = vmov (!%p2764_p8), 0  }
 0xcce   : > { %2843 = vmatpush3.bf16.msra.mxu0 %v3225_v57 }
 0xccf   : > { %2844 = vmatprep.subr.bf16.mxu0 %v3226_v58 }
 0xcd2   : > { %2845 = vmatpush3.bf16.msra.mxu0 %v3227_v59 }
 0xcd3   : > { %2396 = vmatprep.subr.bf16.mxu0 (!%p2764_p8), %v3286_v42 }
 0xd88   : > { %v2013_v60 = vpop.f32.mrb[16].mxu0  ;;  %v2056_v61 = vpop.f32.mrb[32].mxu1 }
 0xd89   : > { %v2744_v36 = vmul.f32 -1.442695, %v2013_v60  ;;  %v2015_v62 = vpop.f32.mrb[17].mxu0  ;;  %v2058_v63 = vpop.f32.mrb[33].mxu1 }
 0xd8a   : > { %v2745_v0 = vmul.f32 -1.442695, %v2015_v62  ;;  %v2017_v2 = vpop.f32.mrb[18].mxu0  ;;  %v2060_v3 = vpop.f32.mrb[34].mxu1 }
 0xd8b   : > { %3268 = vpow2.f32 %v2744_v36  ;;  %v2746_v4 = vmul.f32 -1.442695, %v2017_v2  ;;  %v2019_v6 = vpop.f32.mrb[19].mxu0  ;;  %v2062_v7 = vpop.f32.mrb[35].mxu1 }
 0xd8c   : > { %3270 = vpow2.f32 %v2745_v0  ;;  %v2747_v30 = vmul.f32 -1.442695, %v2019_v6 }
 0xd8d   : > { %3272 = vpow2.f32 %v2746_v4 }
 0xd8e   : > { %3274 = vpow2.f32 %v2747_v30 }
 0xd95   : > { %v3269_v8 = vpop.eup %3268 }
 0xd96   : > { %v3271_v9 = vpop.eup %3270  ;;  %v2077_v32 = vadd.f32 1.0, %v3269_v8 }
 0xd97   : > { %v3273_v10 = vpop.eup %3272  ;;  %v2078_v12 = vadd.f32 1.0, %v3271_v9 }
 0xd98   : > { %v3275_v13 = vpop.eup %3274  ;;  %3276 = vrcp.f32 %v2077_v32  ;;  %v2079_v14 = vadd.f32 1.0, %v3273_v10 }
 0xd99   : > { %3278 = vrcp.f32 %v2078_v12  ;;  %v2080_v15 = vadd.f32 1.0, %v3275_v13 }
 0xd9a   : > { %3280 = vrcp.f32 %v2079_v14 }
 0xd9b   : > { %3282 = vrcp.f32 %v2080_v15 }
 0xda2   : > { %v3277_v16 = vpop.eup %3276 }
 0xda3   : > { %v3279_v18 = vpop.eup %3278  ;;  %v2089_v19 = vmul.f32 %v3277_v16, %v2013_v60 }
 0xda4   : > { %v3281_v20 = vpop.eup %3280  ;;  %v2090_v21 = vmul.f32 %v3279_v18, %v2015_v62 }
 0xda5   : > { %v3283_v22 = vpop.eup %3282  ;;  %v2093_v23 = vmul.f32 %v2089_v19, %v2056_v61  ;;  %v2091_v24 = vmul.f32 %v3281_v20, %v2017_v2  ;;  %v2765_v2 = vld [vmem:[%s4314_s20] ss:$0 sm:$0xff] (!%p2764_p8) }
 0xda6   : > { %v2094_v25 = vmul.f32 %v2090_v21, %v2058_v63  ;;  %v2092_v26 = vmul.f32 %v3283_v22, %v2019_v6 }
 0xda7   : > { %v2095_v27 = vmul.f32 %v2091_v24, %v2060_v3 }
 0xda8   : > { %v2096_v29 = vmul.f32 %v2092_v26, %v2062_v7 }
 0xda9   : > { %v2097_v31 = vpack.c.bf16 %v2095_v27, %v2093_v23 }
 0xdaa   : > { %v2098_v33 = vpack.c.bf16 %v2096_v29, %v2094_v25 }
 0xdac   : > { %2259 = vmatprep.mubr.bf16.mxu0 %v2098_v33 }
 0xdad   : > { %2260 = vmatmul.mubr.bf16.vlgmr.msra.gmra.mrb[20].mxu0 %v2097_v31 }
 0xdae   : > { %2397 = vmatpush1.bf16.msra.mxu0 (!%p2764_p8), %v3288_v43  ;;  %2428 = vmatprep.mubr.bf16.mxu0 (!%p2764_p8), %v3549_v39 }
 0xdaf   : > { %2398 = vmatprep.subr.bf16.mxu0 (!%p2764_p8), %v3289_v45 }
 0xdb2   : > { %2399 = vmatpush1.bf16.msra.mxu0 (!%p2764_p8), %v3291_v46 }
 0xe80   : > { %v2846_v11 = vpop.f32.mrb[20].mxu0 }
 0xe81   : > { %v2847_v34 = vpop.f32.mrb[21].mxu0 }
 0xe82   : > { %v2848_v35 = vadd.f32 %v2847_v34, %v2846_v11  ;;  %v2849_v37 = vpop.f32.mrb[22].mxu0  ;;  %2275 = sbr.rel (%p2764_p8) target bundleno = 4103 (0x1007), region = 88 }
 0xe83   : > { %v2850_v17 = vpop.f32.mrb[23].mxu0 }
 0xe84   : > { %v2268_v38 = vadd.f32 %v4109_v1, %v2848_v35  ;;  %v2851_v28 = vadd.f32 %v2850_v17, %v2849_v37  ;;  %v3292_v1 = vld [vmem:[#allocation8 + $0x24] ss:$8 sps:$4 sm:$0xff] (!%p2764_p8)  }
 0xe85   : > { %2400 = vmatprep.subr.bf16.mxu0 (!%p2764_p8), %v3292_v1 }
 0xe86   : > { %2270 = vst [vmem:[#allocation2] sm:$0xff] %v2268_v38  ;;  %v2269_v40 = vadd.f32 %v4111_v5, %v2851_v28  ;;  %v2277_v41 = vmul.f32 (!%p2764_p8), %v2268_v38, %v2268_v38  ;;  %2401 = vmatpush1.bf16.msra.mxu0 (!%p2764_p8), %v3294_v47  ;;  %v3295_v5 = vld [vmem:[#allocation8 + $0x34] ss:$8 sps:$4 sm:$0xff] (!%p2764_p8)  }
 0xe87   : > { %2402 = vmatprep.subr.bf16.mxu0 (!%p2764_p8), %v3295_v5 }
 0xe88   : > { %2271 = vst [vmem:[#allocation2 + $0x8] sm:$0xff] %v2269_v40  ;;  %2279 = vadd.xlane.f32.xlu0 (!%p2764_p8), %v2277_v41  ;;  %v2278_v44 = vmul.f32 (!%p2764_p8), %v2269_v40, %v2269_v40 }
 0xe8a   : > { %2403 = vmatpush1.bf16.msra.mxu0 %v3297_v48 }
 0xe8b   : > { %2404 = vmatprep.subr.bf16.mxu0 %v3298_v49 }
 0xe8c   : > { %2281 = vadd.xlane.f32.xlu0 %v2278_v44 }
 0xe8e   : > { %2405 = vmatpush1.bf16.msra.mxu0 %v3300_v50 }
 0xe8f   : > { %2406 = vmatprep.subr.bf16.mxu0 %v3301_v51 }
 0xe92   : > { %2407 = vmatpush1.bf16.msra.mxu0 %v3303_v52 }
 0xe93   : > { %2408 = vmatprep.subr.bf16.mxu0 %v3304_v53 }
 0xe96   : > { %2409 = vmatpush1.bf16.msra.mxu0 %v3306_v54 }
 0xe97   : > { %2410 = vmatprep.subr.bf16.mxu0 %v3307_v55 }
 0xe9a   : > { %2411 = vmatpush1.bf16.msra.mxu0 %v3309_v56 }
 0xf15   : > { %v2280_v57 = vpop.xlane.xlu0 %2279 }
 0xf16   : > { %v2283_v58 = vmul.f32 0.0078125, %v2280_v57 }
 0xf18   : > { %v2285_v59 = vadd.f32 1e-06, %v2283_v58 }
 0xf19   : > { %v2282_v60 = vpop.xlane.xlu0 %2281 }
 0xf1a   : > { %3310 = vrsqrt.f32 %v2285_v59  ;;  %v2284_v61 = vmul.f32 0.0078125, %v2282_v60 }
 0xf1c   : > { %v2286_v36 = vadd.f32 1e-06, %v2284_v61 }
 0xf1e   : > { %3312 = vrsqrt.f32 %v2286_v36 }
 0xf24   : > { %v3311_v62 = vpop.eup %3310 }
 0xf25   : > { %v2289_v63 = vmul.f32 %v3311_v62, %v2268_v38 }
 0xf27   : > { %v2297_v6 = vmul.f32 %v2765_v2, %v2289_v63 }
 0xf28   : > { %v3313_v0 = vpop.eup %3312 }
 0xf29   : > { %v2290_v3 = vmul.f32 %v3313_v0, %v2269_v40 }
 0xf2b   : > { %v2298_v4 = vmul.f32 %v2765_v2, %v2290_v3 }
 0xf2d   : > { %v2299_v7 = vpack.c.bf16 %v2298_v4, %v2297_v6 }
 0xf2f   : > { %2429 = vmatmul.mubr.bf16.vlgmr.msra.gmra.mrb[0].mxu0 %v2299_v7 }
0x1002   : > { %v2430_v30 = vpop.f32.mrb[0].mxu0 }
0x1003   : > { %2439 = vst [vmem:[%s3888_s14] sm:$0xff] %v2430_v30  ;;  %v2432_v8 = vpop.f32.mrb[1].mxu0 }
0x1004   : > { %2440 = vst [vmem:[%s3888_s14 + $0x8] sm:$0xff] %v2432_v8  ;;  %v2434_v9 = vpop.f32.mrb[2].mxu0 }
0x1005   : > { %2441 = vst [vmem:[%s3888_s14 + $0x10] sm:$0xff] %v2434_v9  ;;  %v2436_v32 = vpop.f32.mrb[3].mxu0 }
0x1006   : > { %2442 = vst [vmem:[%s3888_s14 + $0x18] sm:$0xff] %v2436_v32 }
0x1007 PF: > { %s4315_s17 = sld [smem:[#allocation19_spill]]  ;;  %s2792_s21 = sshll.u32 %s3520_s28, 9 }
0x1008   : > { %s4316_s19 = sld [smem:[#allocation33_spill]]  ;;  %s2458_s30 = sshll.u32 %s3888_s14, 4  ;;  %s4177_s30 = int_to_ptr.vmem [resolvable:$true] %s2458_s30 }
0x1009   : > { %s4317_s11 = sand.u32 1, %s3496_s22   ;;  %s3402_s9 = scalar_lea.vmem %s4177_s30, 512 }
0x100a   : > { %s4181_s12 = scalar_lea.sflag [#allocation5], %s4317_s11  ;;  %p3403_p12 = scmp.ne.s32.totalorder %s4177_s30, %s3402_s9 }
0x100b   : > { %s3550_s28 = smov [#allocation9]  }
0x100c   : > { %s3406_s29 = sshll.u32 %s3550_s28, 4  ;;  %s3407_s29 = int_to_ptr.vmem [resolvable:$false] %s3406_s29 }
0x100d   : > { %p4318_p1 = scmp.ne.s32.totalorder %s4315_s17, 0  ;;  %s3408_s24 = scalar_lea.vmem %s3407_s29, 1024 }
0x100e   : > { %s4174_s5 = scalar_lea.hbm %s4316_s19, %s2792_s21  ;;  %p3409_p9 = scmp.lt.s32.totalorder %s4177_s30, %s3407_s29 }
0x100f   : > { %p3404_p10 = pnand %p3403_p12, %p4318_p1  ;;  %p3410_p11 = scmp.lt.s32.totalorder %s3408_s24, %s3402_s9 }
0x1011   : > { %p3405_p3 = pneg %p3404_p10  ;;  %p3411_p6 = por %p3410_p11, %p3409_p9 }
0x1013   : > { %p3412_p7 = pnand %p3411_p6, %p3405_p3 }
0x1015   : > { %3415 = shalt.err (!%p3412_p7)
}
0x1016   : > { %s3416_s14 = scalar_lea.hbm %s4174_s5, 512  ;;  %s3420_s18 = scalar_lea.hbm %s4316_s19, 1024 }
0x1017   : > { %p3417_p4 = scmp.ne.s32.totalorder %s4174_s5, %s3416_s14  ;;  %p3421_p2 = scmp.lt.u32.totalorder %s4174_s5, %s4316_s19 }
0x1018   : > { %p3422_p5 = scmp.lt.u32.totalorder %s3420_s18, %s3416_s14  ;;  %p3424_p12 = scmp.lt.u32.totalorder %s3416_s14, %s4174_s5 }
0x1019   : > { %p3418_p0 = pnand %p3417_p4, %p4318_p1 }
0x101a   : > { %p3423_p8 = por %p3422_p5, %p3421_p2 }
0x101b   : > { %p3419_p13 = pneg %p3418_p0 }
0x101c   : > { %p3425_p10 = por %p3424_p12, %p3423_p8 }
0x101e   : > { %p3426_p3 = pnand %p3425_p10, %p3419_p13 }
0x1020   : > { %3429 = shalt.err (!%p3426_p3)
}
0x1021   : > { %s3551_s26 = smov 256   ;;  %s3552_s20 = smov 16  }
0x1022   : > { %2975 = dma.vmem_to_hbm [thread:$0]  (%p4318_p1), %s4177_s30, 512, %s4174_s5, %s4181_s12, %s3551_s26, %s3551_s26, %s3552_s20  }
0x1023 PF: > { %s4319_s21 = sld [smem:[#allocation14_spill]]  ;;  %s4320_s23 = sld [smem:[#allocation20_spill]] }
0x1024   : > { %p2995_p9 = scmp.ge.s32.totalorder %s3532_s13, 2 }
0x1029   : > { %s2473_s2 = sand.u32 1, %s4319_s21   ;;  %p4321_p11 = scmp.ne.s32.totalorder %s4320_s23, 0 }
0x102a   : > { %s2474_s11 = scalar_lea.sflag [#allocation5], %s2473_s2 }
0x102b   : > { %p2989_p6 = pnand %p2995_p9, %p4321_p11 }
0x102d   : > { %3487 = dma.done.wait (!%p2989_p6), %s2474_s11, 512  }
0x102e   : > { %3489 = vsyncadd (!%p2989_p6), %s2474_s11, 4294966784  ;;  %s31_s13 = sadd.s32 1, %s3532_s13   ;;  %s4322_s9 = sld [smem:[#allocation15_spill]] }
0x102f   : > { %p28_p7 = scmp.ge.s32.totalorder %s31_s13, 6   ;;  %s4323_s23 = sld [smem:[#allocation24_spill]] }
0x1030   : > { %s4324_s17 = sld [smem:[#allocation16_spill]]  ;;  %s4325_s26 = sld [smem:[#allocation23_spill]] }
0x1031   : > { %s4326_s27 = sld [smem:[#allocation17_spill]]  ;;  %s4327_s28 = sld [smem:[#allocation18_spill]] }
0x1032   : > { %s4328_s29 = sld [smem:[#allocation21_spill]]  ;;  %s4329_s30 = sld [smem:[#allocation22_spill]] }
0x1033   : > { %s4330_s21 = smov %s3496_s22  ;;  %s4332_s24 = smov %s3508_s25 }
0x1034   : > { %s4331_s22 = smov %s4322_s9  ;;  %30 = sbr.rel (!%p28_p7) target bundleno = 21 (0x15), region = 153 }
0x1036   : > { %s4333_s25 = smov %s4324_s17 }
0x103b   :  { %2479 = vsyncpa [#allocation4], 1 }
0x103c   :  { %2481 = vsyncpa [#allocation4 + $0x1], 1 }
0x103d   :  { %2482 = vsyncpa [#allocation7], 1 }
0x103e   :  { %2484 = vsyncpa [#allocation7 + $0x1], 1 }
0x103f   :  { %2485 = vsyncpa [#allocation5], 1 }
0x1040   :  { %2487 = vsyncpa [#allocation5 + $0x1], 1 }

</bundles_post_ra>
